<compile_context>
chip_gen: v5e
topology: v5e:2x2
jax: 0.10.0
libtpu: 0.0.40
codegen_flags: <defaults>
</compile_context>

<pallas_src>
import jax
import jax.numpy as jnp
from jax.experimental import pallas as pl
from jax.experimental.pallas import tpu as pltpu


def _round_up(v, m):
    return ((v + m - 1) // m) * m


# ---------------------------------------------------------------------------
# Kernels
# ---------------------------------------------------------------------------

def _affine_kernel_f32(x_ref, w_ref, b_ref, o_ref):
    """f32 output: accumulate directly into the resident output tile."""
    k = pl.program_id(2)
    prod = jnp.dot(
        x_ref[...].astype(jnp.bfloat16),   # in-kernel cast (VPU, hidden under MXU)
        w_ref[...],
        preferred_element_type=jnp.float32,
    )

    @pl.when(k == 0)
    def _init():
        o_ref[...] = prod + b_ref[...]     # bias folded into the first step

    @pl.when(k != 0)
    def _acc():
        o_ref[...] += prod


def _affine_kernel_acc(x_ref, w_ref, b_ref, o_ref, acc_ref):
    """Non-f32 output: f32 scratch accumulator, init with the first dot."""
    k = pl.program_id(2)
    prod = jnp.dot(
        x_ref[...].astype(jnp.bfloat16),
        w_ref[...],
        preferred_element_type=jnp.float32,
    )

    @pl.when(k == 0)
    def _init():
        acc_ref[...] = prod

    @pl.when(k != 0)
    def _acc():
        acc_ref[...] += prod

    @pl.when(k == pl.num_programs(2) - 1)
    def _epilogue():
        o_ref[...] = (acc_ref[...] + b_ref[...]).astype(o_ref.dtype)


# ---------------------------------------------------------------------------
# Tiling / dispatch
# ---------------------------------------------------------------------------

def _pick_tiles(M, N, K):
    # 512-tiles: ~4x x/w reuse per HBM byte vs 256 and 4x fewer grid steps,
    # while the double-buffered footprint stays a few MiB (well under every
    # generation's scoped VMEM with the explicit limit below).
    tm = min(512, _round_up(M, 8))
    tn = min(512, _round_up(N, 128))        # lane-dense (multiple of 128) stores

    # tk must divide K exactly so garbage from a ragged K block can never mix
    # into valid outputs (M/N raggedness only affects dropped rows/cols).
    if K % 512 == 0:
        tk = 512
    elif K % 256 == 0:
        tk = 256
    elif K % 128 == 0:
        tk = 128
    else:
        tk = K                               # full-K block (== array dim, legal)

    # v7x: keep >= 2 parallel (i, j) output tiles so both TensorCores get work.
    while pl.cdiv(M, tm) * pl.cdiv(N, tn) < 2 and tm > 128:
        tm = max(128, _round_up(tm // 2, 8))

    return tm, tn, tk


def _affine_pallas(x, w_bf16, b_f32, out_dtype):
    """fun(x) = x @ w + b on the MXU (bf16 operands, f32 accumulation)."""
    M, K = x.shape
    N = w_bf16.shape[1]
    tm, tn, tk = _pick_tiles(M, N, K)
    grid = (pl.cdiv(M, tm), pl.cdiv(N, tn), pl.cdiv(K, tk))

    f32_out = jnp.dtype(out_dtype) == jnp.dtype(jnp.float32)
    kernel = _affine_kernel_f32 if f32_out else _affine_kernel_acc
    scratch = () if f32_out else (pltpu.VMEM((tm, tn), jnp.float32),)

    out_itemsize = jnp.dtype(out_dtype).itemsize
    x_itemsize = jnp.dtype(x.dtype).itemsize
    vmem_bytes = (
        2 * tm * tk * x_itemsize            # double-buffered x tiles (cast in-kernel)
        + 2 * tk * tn * 2                   # double-buffered bf16 w tiles
        + 2 * tn * 4                        # bias row
        + 2 * tm * tn * out_itemsize        # output tile
        + (0 if f32_out else tm * tn * 4)   # f32 accumulator scratch
    )
    # 2x headroom, floor 16 MiB, cap 40 MiB (v7x physical VMEM is 64 MiB/TC).
    vmem_limit = int(min(max(2 * vmem_bytes, 16 << 20), 40 << 20))

    cost = pl.CostEstimate(
        flops=2 * M * N * K,
        transcendentals=0,
        bytes_accessed=M * K * x_itemsize + K * N * 2 + N * 4 + M * N * out_itemsize,
    )

    return pl.pallas_call(
        kernel,
        out_shape=jax.ShapeDtypeStruct((M, N), out_dtype),
        grid_spec=pltpu.PrefetchScalarGridSpec(
            num_scalar_prefetch=0,
            grid=grid,
            in_specs=[
                pl.BlockSpec((tm, tk), lambda i, j, k: (i, k)),   # x tile
                pl.BlockSpec((tk, tn), lambda i, j, k: (k, j)),   # w tile
                pl.BlockSpec((1, tn), lambda i, j, k: (0, j)),    # bias row
            ],
            out_specs=pl.BlockSpec((tm, tn), lambda i, j, k: (i, j)),
            scratch_shapes=scratch,
        ),
        compiler_params=pltpu.CompilerParams(
            dimension_semantics=("parallel", "parallel", "arbitrary"),
            vmem_limit_bytes=vmem_limit,
        ),
        cost_estimate=cost,
    )(x, w_bf16, b_f32)


# Below this much work (and below one full tile per dim) the fused XLA dot
# beats pad/launch/per-grid-step overheads.
_PALLAS_MIN_WORK = 1 << 24  # M * N * K


def _affine_impl(x2d, w_bf16, b_f32):
    M, K = x2d.shape
    N = w_bf16.shape[1]
    out_dtype = x2d.dtype if jnp.issubdtype(x2d.dtype, jnp.floating) else jnp.float32

    use_pallas = (
        min(M, N, K) >= 128
        and M * N * K >= _PALLAS_MIN_WORK
        and (K % 128 == 0 or K <= 2048)      # avoid giant full-K blocks
    )
    if not use_pallas:
        # Same bf16-operand / f32-accumulate numerics as the Pallas path so
        # results do not depend on which branch a tensor takes.
        y = jnp.dot(
            x2d.astype(jnp.bfloat16), w_bf16, preferred_element_type=jnp.float32
        ) + b_f32
        return y.astype(out_dtype)
    return _affine_pallas(x2d, w_bf16, b_f32, out_dtype)


@jax.jit
def _affine_batched(vals, w_bf16, b_f32):
    """Flatten each value to rows, concat along M, one affine call, split back."""
    n = w_bf16.shape[1]
    flats = [v.reshape(-1, v.shape[-1]) for v in vals]
    rows = [f.shape[0] for f in flats]
    x2d = flats[0] if len(flats) == 1 else jnp.concatenate(flats, axis=0)
    y = _affine_impl(x2d, w_bf16, b_f32)
    outs, off = [], 0
    for v, r in zip(vals, rows):
        outs.append(y[off:off + r].reshape(*v.shape[:-1], n))
        off += r
    return tuple(outs)


# ---------------------------------------------------------------------------
# fun / ValMap wrappers
# ---------------------------------------------------------------------------

class AffineFun:
    """fun(v) = v @ w + b with static weight prep hoisted to construction."""

    def __init__(self, w, b):
        w = jnp.asarray(w)
        b = jnp.asarray(b)
        assert w.ndim == 2 and b.shape == (w.shape[1],)
        self.k = int(w.shape[0])
        self.n = int(w.shape[1])
        self.w_bf16 = w.astype(jnp.bfloat16)                 # cast once per fun
        self.b_f32 = b.astype(jnp.float32).reshape(1, self.n)

    def __call__(self, v):
        return _affine_batched((v,), self.w_bf16, self.b_f32)[0]

    def apply_dict(self, d):
        """Batched ValMap path: one Pallas launch per (dtype, feature-dim) group."""
        groups = {}
        for key, v in d.items():
            groups.setdefault((v.dtype, v.shape[-1]), []).append(key)
        out = {}
        for (_, _), group_keys in groups.items():
            vals = tuple(d[key] for key in group_keys)
            outs = _affine_batched(vals, self.w_bf16, self.b_f32)
            for key, o in zip(group_keys, outs):
                out[key] = o
        return out


class ValMapPallas:
    """Faithful JAX port of uwnet ValMap: applies `fun` to every dict value."""

    # TODO(synk): the original wraps the result in TensorDict (a dict subclass
    # with arithmetic sugar); a plain dict is returned here.

    def __init__(self, fun):
        self.fun = fun

    def forward(self, x):
        # Fast path: a shared affine fun lets all dict values be concatenated
        # into a single Pallas launch (one weight stream, one dispatch).
        if isinstance(self.fun, AffineFun):
            return self.fun.apply_dict(x)
        out = {}
        for key, val in x.items():
            out[key] = self.fun(val)
        return out

    __call__ = forward


# ---------------------------------------------------------------------------
# Demo / correctness check
# ---------------------------------------------------------------------------

if __name__ == "__main__":
    key = jax.random.PRNGKey(0)
    kw, kb, k1, k2 = jax.random.split(key, 4)

    K, N = 256, 256
    # Parameters captured by the mapped `fun` (prepared once inside AffineFun).
    w = jax.random.normal(kw, (K, N), dtype=jnp.float32) * 0.05
    b = jax.random.normal(kb, (N,), dtype=jnp.float32) * 0.05

    fun = AffineFun(w, b)
    mod = ValMapPallas(fun)

    # TensorDict-style input: two fields sharing the feature dim K.  Both are
    # batched into one Pallas launch (total 520 rows -> 2 parallel M tiles).
    x = {
        "sl": jax.random.normal(k1, (8, K), dtype=jnp.float32),
        "qt": jax.random.normal(k2, (512, K), dtype=jnp.float32),
    }

    out = jax.block_until_ready(mod(x))

    # Reference: identical bf16-operand / f32-accumulate numerics.
    wb = w.astype(jnp.bfloat16)
    for name, v in x.items():
        ref = jnp.dot(
            v.astype(jnp.bfloat16), wb, preferred_element_type=jnp.float32
        ) + b[None, :]
        assert out[name].shape == (v.shape[0], N), name
        assert out[name].dtype == v.dtype, name
        assert jnp.allclose(out[name], ref, atol=2e-2, rtol=2e-2), f"{name} mismatch"

    print("KERNEL_OK")
</pallas_src>

<mosaic_0001>
module attributes {stable_mosaic.version = 11 : i64} {
  func.func @_affine_kernel_f32(%arg0: i32, %arg1: i32, %arg2: i32, %arg3: memref<512x256xf32, #tpu.memory_space<vmem>>, %arg4: memref<256x256xbf16, #tpu.memory_space<vmem>>, %arg5: memref<1x256xf32, #tpu.memory_space<vmem>>, %arg6: memref<512x256xf32, #tpu.memory_space<vmem>>) attributes {dimension_semantics = [#tpu.dimension_semantics<parallel>, #tpu.dimension_semantics<parallel>, #tpu.dimension_semantics<arbitrary>], iteration_bounds = array<i64: 2, 1, 1>, scalar_prefetch = 0 : i64, scratch_operands = 0 : i64, tpu.core_type = #tpu.core_type<tc>, window_params = [{transform_indices = @transform_0, window_bounds = array<i64: 512, 256>}, {transform_indices = @transform_1, window_bounds = array<i64: 256, 256>}, {transform_indices = @transform_2, window_bounds = array<i64: 1, 256>}, {transform_indices = @transform_3, window_bounds = array<i64: 512, 256>}]} {
    %c0 = arith.constant 0 : index
    %c0_0 = arith.constant 0 : index
    %0 = vector.load %arg3[%c0, %c0_0] : memref<512x256xf32, #tpu.memory_space<vmem>>, vector<512x256xf32>
    %1 = arith.truncf %0 : vector<512x256xf32> to vector<512x256xbf16>
    %c0_1 = arith.constant 0 : index
    %c0_2 = arith.constant 0 : index
    %2 = vector.load %arg4[%c0_1, %c0_2] : memref<256x256xbf16, #tpu.memory_space<vmem>>, vector<256x256xbf16>
    %cst = arith.constant dense<0.000000e+00> : vector<512x256xf32>
    %3 = tpu.matmul %1, %2, %cst {dimension_numbers = #tpu.dot_dimension_numbers<[1], [0], [0], [1], [0, 0, 1, 1], [], []>} : vector<512x256xbf16>, vector<256x256xbf16>, vector<512x256xf32> -> vector<512x256xf32>
    %c0_i32 = arith.constant 0 : i32
    %4 = arith.cmpi eq, %arg2, %c0_i32 : i32
    %5 = arith.extui %4 : i1 to i32
    %c0_i32_3 = arith.constant 0 : i32
    %6 = arith.cmpi ne, %5, %c0_i32_3 : i32
    scf.if %6 {
      %c0_6 = arith.constant 0 : index
      %c0_7 = arith.constant 0 : index
      %10 = vector.load %arg5[%c0_6, %c0_7] : memref<1x256xf32, #tpu.memory_space<vmem>>, vector<1x256xf32>
      %11 = vector.broadcast %10 : vector<1x256xf32> to vector<512x256xf32>
      %12 = arith.addf %3, %11 : vector<512x256xf32>
      %c0_8 = arith.constant 0 : index
      %c0_9 = arith.constant 0 : index
      %13 = vector.load %arg6[%c0_8, %c0_9] : memref<512x256xf32, #tpu.memory_space<vmem>>, vector<512x256xf32>
      tpu.vector_store %arg6[%c0_8, %c0_9], %12 {strides = array<i32>} : memref<512x256xf32, #tpu.memory_space<vmem>>, vector<512x256xf32>,
    } else {
    }
    %c0_i32_4 = arith.constant 0 : i32
    %7 = arith.cmpi ne, %arg2, %c0_i32_4 : i32
    %8 = arith.extui %7 : i1 to i32
    %c0_i32_5 = arith.constant 0 : i32
    %9 = arith.cmpi ne, %8, %c0_i32_5 : i32
    scf.if %9 {
      %c0_6 = arith.constant 0 : index
      %c0_7 = arith.constant 0 : index
      %10 = vector.load %arg6[%c0_6, %c0_7] : memref<512x256xf32, #tpu.memory_space<vmem>>, vector<512x256xf32>
      %11 = arith.addf %10, %3 : vector<512x256xf32>
      %c0_8 = arith.constant 0 : index
      %c0_9 = arith.constant 0 : index
      %12 = vector.load %arg6[%c0_8, %c0_9] : memref<512x256xf32, #tpu.memory_space<vmem>>, vector<512x256xf32>
      tpu.vector_store %arg6[%c0_8, %c0_9], %11 {strides = array<i32>} : memref<512x256xf32, #tpu.memory_space<vmem>>, vector<512x256xf32>,
    } else {
    }
    return
  }
  func.func @transform_0(%arg0: i32, %arg1: i32, %arg2: i32) -> (i32, i32) {
    %c0_i32 = arith.constant 0 : i32
    return %arg0, %arg2 : i32, i32
  }
  func.func @transform_1(%arg0: i32, %arg1: i32, %arg2: i32) -> (i32, i32) {
    %c0_i32 = arith.constant 0 : i32
    return %arg2, %arg1 : i32, i32
  }
  func.func @transform_2(%arg0: i32, %arg1: i32, %arg2: i32) -> (i32, i32) {
    %c0_i32 = arith.constant 0 : i32
    %c0_i32_0 = arith.constant 0 : i32
    return %c0_i32, %arg1 : i32, i32
  }
  func.func @transform_3(%arg0: i32, %arg1: i32, %arg2: i32) -> (i32, i32) {
    %c0_i32 = arith.constant 0 : i32
    return %arg0, %arg1 : i32, i32
  }
}

</mosaic_0001>

<bundles_post_ra>
// kernel: _affine_batched.1
= control target key start
LH: loop header
LB: loop body
LE: loop exit
PB: predicated region body
PF: predicated region fallthrough
CT: control target
= control target key end

     0   :  { %s2712_s12 = smov 0   ;;  %s2714_s13 = smov 0   ;;  %s3502_s0 = inlined_call_operand.vmem [shape: f32[520,256], index: 0, kind: input, shape index: {}]   ;;  %s3503_s1 = inlined_call_operand.vmem [shape: bf16[256,256], index: 1, kind: input, shape index: {}]   ;;  %s3504_s2 = inlined_call_operand.vmem [shape: f32[1,256], index: 2, kind: input, shape index: {}]   ;;  %s3505_s3 = inlined_call_operand.vmem [shape: f32[520,256], index: 3, kind: output, shape index: {}]  }
   0x1   :  { %s2716_s14 = smov 0   ;;  %s2718_s15 = smov 0  }
   0x2   :  { %s2720_s16 = smov 0  }
   0x3 LB: > { %s2288_s17 = sadd.s32 4294967295, %s2658_s16   ;;  %s32_s18 = sadd.s32 1, %s2654_s15  ;;  %s2658_s16 = sphi %s2720_s16, %s13_s16   ;;  %s2654_s15 = sphi %s2718_s15, %s3515_s15   ;;  %s2650_s14 = sphi %s2716_s14, %s3514_s14   ;;  %s2646_s13 = sphi %s2714_s13, %s3513_s13   ;;  %s2642_s12 = sphi %s2712_s12, %s3512_s12  }
   0x4   : > { %p34_p0 = scmp.ge.s32.totalorder %s32_s18, 2  ;;  %s123_s19 = sadd.s32 1, %s2646_s13 }
   0x5   : > { %p133_p1 = scmp.ne.s32.totalorder %s2646_s13, %s2642_s12  ;;  %p134_p2 = scmp.eq.s32.totalorder %s2288_s17, 1 }
   0x6   : > { %s3517_s18 = smov (%p34_p0, %s32_s18), 0  ;;  %p2294_p4 = scmp.ge.s32.totalorder %s2658_s16, 1 }
   0x7   : > { %p2744_p3 = por %p134_p2, %p133_p1  ;;  %s118_s21 = ssub.s32 %s2654_s15, %s3517_s18 }
   0x8   : > { %p206_p5 = scmp.lt.s32.totalorder %s2658_s16, 3  ;;  %p121_p6 = scmp.eq.s32.totalorder %s118_s21, 0 }
   0xa   : > { %p207_p7 = pnand %p2294_p4, %p206_p5 }
   0xb   : > { %s2753_s22 = scalar_select %p121_p6, %s2646_s13, %s123_s19  }
   0xc   : > { %210 = sbr.rel (%p207_p7) target bundleno = 758 (0x2f6), region = 32  ;;  %s2918_s9 = sshll.u32 (!%p207_p7), %s2650_s14, 6 }
   0xd   : > { %p260_p8 = scmp.lt.s32.totalorder (!%p207_p7), %s2918_s9, 64  ;;  %s250_s25 = sand.u32 (!%p207_p7), 1, %s2642_s12  }
  0x11   : > { %v2357_v0 = vld [vmem:[%s3503_s1 + $0x70] sm:$0xf]  ;;  %v2462_v1 = vld [vmem:[%s3503_s1 + $0x74] sm:$0xf0]  ;;  %v2461_v5 = vld [vmem:[%s3503_s1 + $0x74] sm:$0xf] }
  0x12   : > { %v2421_v2 = vld [vmem:[%s3503_s1 + $0xf0] sm:$0xf]  ;;  %v2358_v3 = vor.u32 %v2462_v1, %v2357_v0  ;;  %v2478_v4 = vld [vmem:[%s3503_s1 + $0xf4] sm:$0xf0]  ;;  %v2359_v6 = vld [vmem:[%s3503_s1 + $0x78] sm:$0xf0] }
  0x13   : > { %v2422_v7 = vor.u32 %v2478_v4, %v2421_v2  ;;  %v2362_v8 = vor.u32 %v2461_v5, %v2359_v6  ;;  %v2477_v9 = vld [vmem:[%s3503_s1 + $0xf4] sm:$0xf]  ;;  %v2423_v10 = vld [vmem:[%s3503_s1 + $0xf8] sm:$0xf0]  ;;  %v2349_v11 = vld [vmem:[%s3503_s1 + $0x60] sm:$0xf] }
  0x14   : > { %683 = vmatpush.bf16.msra.mxu0 %v2358_v3  ;;  %v2426_v12 = vor.u32 %v2477_v9, %v2423_v10  ;;  %v2460_v13 = vld [vmem:[%s3503_s1 + $0x64] sm:$0xf0]  ;;  %v2413_v14 = vld [vmem:[%s3503_s1 + $0xe0] sm:$0xf]  ;;  %v2459_v18 = vld [vmem:[%s3503_s1 + $0x64] sm:$0xf] }
  0x15   : > { %v2476_v15 = vld [vmem:[%s3503_s1 + $0xe4] sm:$0xf0]  ;;  %852 = vmatpush.bf16.msra.mxu1 %v2422_v7  ;;  %1021 = vmatpush.bf16.msra.mxu2 %v2362_v8  ;;  %v2350_v16 = vor.u32 %v2460_v13, %v2349_v11  ;;  %v2351_v19 = vld [vmem:[%s3503_s1 + $0x68] sm:$0xf0]  ;;  %v2475_v20 = vld [vmem:[%s3503_s1 + $0xe4] sm:$0xf] }
  0x16   : > { %v2414_v17 = vor.u32 %v2476_v15, %v2413_v14  ;;  %1190 = vmatpush.bf16.msra.mxu3 %v2426_v12  ;;  %v2354_v21 = vor.u32 %v2459_v18, %v2351_v19  ;;  %v2415_v22 = vld [vmem:[%s3503_s1 + $0xe8] sm:$0xf0]  ;;  %v2341_v23 = vld [vmem:[%s3503_s1 + $0x50] sm:$0xf]  ;;  %v2458_v24 = vld [vmem:[%s3503_s1 + $0x54] sm:$0xf0] }
  0x17   : > { %v2418_v25 = vor.u32 %v2475_v20, %v2415_v22  ;;  %v2405_v26 = vld [vmem:[%s3503_s1 + $0xd0] sm:$0xf]  ;;  %v2474_v27 = vld [vmem:[%s3503_s1 + $0xd4] sm:$0xf0]  ;;  %v2457_v28 = vld [vmem:[%s3503_s1 + $0x54] sm:$0xf]  ;;  %v2342_v29 = vor.u32 %v2458_v24, %v2341_v23 }
  0x18   : > { %684 = vmatpush.bf16.msra.mxu0 %v2350_v16  ;;  %v2343_v30 = vld [vmem:[%s3503_s1 + $0x58] sm:$0xf0]  ;;  %v2473_v31 = vld [vmem:[%s3503_s1 + $0xd4] sm:$0xf]  ;;  %v2406_v33 = vor.u32 %v2474_v27, %v2405_v26  ;;  %v2333_v35 = vld [vmem:[%s3503_s1 + $0x40] sm:$0xf] }
  0x19   : > { %v2407_v32 = vld [vmem:[%s3503_s1 + $0xd8] sm:$0xf0]  ;;  %853 = vmatpush.bf16.msra.mxu1 %v2414_v17  ;;  %1022 = vmatpush.bf16.msra.mxu2 %v2354_v21  ;;  %v2346_v34 = vor.u32 %v2457_v28, %v2343_v30  ;;  %v2456_v36 = vld [vmem:[%s3503_s1 + $0x44] sm:$0xf0]  ;;  %v2397_v37 = vld [vmem:[%s3503_s1 + $0xc0] sm:$0xf] }
  0x1a   : > { %1191 = vmatpush.bf16.msra.mxu3 %v2418_v25  ;;  %v2410_v38 = vor.u32 %v2473_v31, %v2407_v32  ;;  %v2472_v39 = vld [vmem:[%s3503_s1 + $0xc4] sm:$0xf0]  ;;  %v2455_v40 = vld [vmem:[%s3503_s1 + $0x44] sm:$0xf]  ;;  %v2335_v41 = vld [vmem:[%s3503_s1 + $0x48] sm:$0xf0]  ;;  %v2334_v44 = vor.u32 %v2456_v36, %v2333_v35 }
  0x1b   : > { %v2471_v42 = vld [vmem:[%s3503_s1 + $0xc4] sm:$0xf]  ;;  %v2399_v43 = vld [vmem:[%s3503_s1 + $0xc8] sm:$0xf0]  ;;  %v2398_v45 = vor.u32 %v2472_v39, %v2397_v37  ;;  %v2338_v46 = vor.u32 %v2455_v40, %v2335_v41  ;;  %v2325_v47 = vld [vmem:[%s3503_s1 + $0x30] sm:$0xf] }
  0x1c   : > { %685 = vmatpush.bf16.msra.mxu0 %v2342_v29  ;;  %v2454_v48 = vld [vmem:[%s3503_s1 + $0x34] sm:$0xf0]  ;;  %v2389_v49 = vld [vmem:[%s3503_s1 + $0xb0] sm:$0xf]  ;;  %v2402_v50 = vor.u32 %v2471_v42, %v2399_v43  ;;  %v2453_v52 = vld [vmem:[%s3503_s1 + $0x34] sm:$0xf] }
  0x1d   : > { %854 = vmatpush.bf16.msra.mxu1 %v2406_v33  ;;  %1023 = vmatpush.bf16.msra.mxu2 %v2346_v34  ;;  %v2470_v51 = vld [vmem:[%s3503_s1 + $0xb4] sm:$0xf0]  ;;  %v2327_v53 = vld [vmem:[%s3503_s1 + $0x38] sm:$0xf0]  ;;  %v2469_v54 = vld [vmem:[%s3503_s1 + $0xb4] sm:$0xf]  ;;  %v2326_v56 = vor.u32 %v2454_v48, %v2325_v47 }
  0x1e   : > { %1192 = vmatpush.bf16.msra.mxu3 %v2410_v38  ;;  %v2391_v55 = vld [vmem:[%s3503_s1 + $0xb8] sm:$0xf0]  ;;  %v2390_v57 = vor.u32 %v2470_v51, %v2389_v49  ;;  %v2330_v58 = vor.u32 %v2453_v52, %v2327_v53  ;;  %v2317_v59 = vld [vmem:[%s3503_s1 + $0x20] sm:$0xf]  ;;  %v2452_v60 = vld [vmem:[%s3503_s1 + $0x24] sm:$0xf0] }
  0x1f   : > { %v2381_v61 = vld [vmem:[%s3503_s1 + $0xa0] sm:$0xf]  ;;  %v2394_v62 = vor.u32 %v2469_v54, %v2391_v55  ;;  %v2468_v63 = vld [vmem:[%s3503_s1 + $0xa4] sm:$0xf0]  ;;  %v2451_v0 = vld [vmem:[%s3503_s1 + $0x24] sm:$0xf]  ;;  %v2318_v4 = vor.u32 %v2452_v60, %v2317_v59 }
  0x20   : > { %686 = vmatpush.bf16.msra.mxu0 %v2334_v44  ;;  %v2319_v1 = vld [vmem:[%s3503_s1 + $0x28] sm:$0xf0]  ;;  %v2467_v2 = vld [vmem:[%s3503_s1 + $0xa4] sm:$0xf]  ;;  %v2309_v5 = vld [vmem:[%s3503_s1 + $0x10] sm:$0xf]  ;;  %v2382_v6 = vor.u32 %v2468_v63, %v2381_v61 }
  0x21   : > { %855 = vmatpush.bf16.msra.mxu1 %v2398_v45  ;;  %1024 = vmatpush.bf16.msra.mxu2 %v2338_v46  ;;  %v2383_v3 = vld [vmem:[%s3503_s1 + $0xa8] sm:$0xf0]  ;;  %v2322_v7 = vor.u32 %v2451_v0, %v2319_v1  ;;  %v2450_v8 = vld [vmem:[%s3503_s1 + $0x14] sm:$0xf0]  ;;  %v2373_v9 = vld [vmem:[%s3503_s1 + $0x90] sm:$0xf] }
  0x22   : > { %1193 = vmatpush.bf16.msra.mxu3 %v2402_v50  ;;  %v2466_v10 = vld [vmem:[%s3503_s1 + $0x94] sm:$0xf0]  ;;  %v2386_v11 = vor.u32 %v2467_v2, %v2383_v3  ;;  %v2449_v12 = vld [vmem:[%s3503_s1 + $0x14] sm:$0xf]  ;;  %v2311_v13 = vld [vmem:[%s3503_s1 + $0x18] sm:$0xf0]  ;;  %v2310_v16 = vor.u32 %v2450_v8, %v2309_v5 }
  0x23   : > { %v2465_v14 = vld [vmem:[%s3503_s1 + $0x94] sm:$0xf]  ;;  %v2375_v15 = vld [vmem:[%s3503_s1 + $0x98] sm:$0xf0]  ;;  %v2301_v17 = vld [vmem:[%s3503_s1] sm:$0xf]  ;;  %v2374_v18 = vor.u32 %v2466_v10, %v2373_v9  ;;  %v2314_v19 = vor.u32 %v2449_v12, %v2311_v13 }
  0x24   : > { %687 = vmatpush.bf16.msra.mxu0 %v2326_v56  ;;  %v2448_v20 = vld [vmem:[%s3503_s1 + $0x4] sm:$0xf0]  ;;  %v2365_v21 = vld [vmem:[%s3503_s1 + $0x80] sm:$0xf]  ;;  %s261_s28 = scalar_select %p260_p8, %s2918_s9, 64  ;;  %v2378_v22 = vor.u32 %v2465_v14, %v2375_v15 }
  0x25   : > { %856 = vmatpush.bf16.msra.mxu1 %v2390_v57  ;;  %1025 = vmatpush.bf16.msra.mxu2 %v2330_v58  ;;  %v2464_v23 = vld [vmem:[%s3503_s1 + $0x84] sm:$0xf0]  ;;  %v2447_v24 = vld [vmem:[%s3503_s1 + $0x4] sm:$0xf]  ;;  %v2303_v25 = vld [vmem:[%s3503_s1 + $0x8] sm:$0xf0]  ;;  %v2302_v28 = vor.u32 %v2448_v20, %v2301_v17 }
  0x26   : > { %1194 = vmatpush.bf16.msra.mxu3 %v2394_v62  ;;  %v2463_v26 = vld [vmem:[%s3503_s1 + $0x84] sm:$0xf]  ;;  %v2367_v27 = vld [vmem:[%s3503_s1 + $0x88] sm:$0xf0]  ;;  %s2446_s19 = sshll.u32 %s261_s28, 4  ;;  %v2366_v29 = vor.u32 %v2464_v23, %v2365_v21  ;;  %v2306_v30 = vor.u32 %v2447_v24, %v2303_v25  ;;  %s2295_s28 = sshll.u32 %s250_s25, 10 }
  0x27   : > { %s2955_s24 = scalar_lea.vmem %s3502_s0, %s2446_s19  ;;  %v2370_v34 = vor.u32 %v2463_v26, %v2367_v27  ;;  %s3000_s12 = scalar_lea.vmem [#allocation2], %s2295_s28  }
  0x28   : > { %688 = vmatpush.bf16.msra.mxu0 %v2318_v4  ;;  %v299_v31 = vld [vmem:[%s2955_s24] sm:$0xff]  ;;  %v301_v32 = vld [vmem:[%s2955_s24 + $0x10] sm:$0xff]  ;;  %v300_v33 = vld [vmem:[%s2955_s24 + $0x8] sm:$0xff]  ;;  %s2022_s29 = ssub.s32 (%p2744_p3), 65, %s2918_s9  ;;  %s2481_s30 = sshll.u32 (%p2744_p3), %s2650_s14, 10 }
  0x29   : > { %857 = vmatpush.bf16.msra.mxu1 %v2382_v6  ;;  %1026 = vmatpush.bf16.msra.mxu2 %v2322_v7  ;;  %v302_v35 = vld [vmem:[%s2955_s24 + $0x18] sm:$0xff]  ;;  %v427_v36 = vpack.c.bf16 %v301_v32, %v299_v31  ;;  %v303_v38 = vld [vmem:[%s2955_s24 + $0x20] sm:$0xff]  ;;  %v305_v39 = vld [vmem:[%s2955_s24 + $0x30] sm:$0xff]  ;;  %p2023_p9 = scmp.lt.s32.totalorder (%p2744_p3), %s2022_s29, 64  ;;  %s3358_s6 = scalar_lea.vmem (%p2744_p3), %s3505_s3, %s2481_s30  }
  0x2a   : > { %1195 = vmatpush.bf16.msra.mxu3 %v2386_v11  ;;  %v428_v37 = vpack.c.bf16 %v302_v35, %v300_v33  ;;  %v304_v40 = vld [vmem:[%s2955_s24 + $0x28] sm:$0xff]  ;;  %v306_v41 = vld [vmem:[%s2955_s24 + $0x38] sm:$0xff]  ;;  %v429_v42 = vpack.c.bf16 %v305_v39, %v303_v38  ;;  %v307_v44 = vld [vmem:[%s2955_s24 + $0x40] sm:$0xff] }
  0x2b   : > { %v430_v43 = vpack.c.bf16 %v306_v41, %v304_v40  ;;  %v309_v45 = vld [vmem:[%s2955_s24 + $0x50] sm:$0xff]  ;;  %v308_v46 = vld [vmem:[%s2955_s24 + $0x48] sm:$0xff]  ;;  %v310_v47 = vld [vmem:[%s2955_s24 + $0x58] sm:$0xff] }
  0x2c   : > { %689 = vmatpush.bf16.msra.mxu0 %v2310_v16  ;;  %v431_v48 = vpack.c.bf16 %v309_v45, %v307_v44  ;;  %v432_v49 = vpack.c.bf16 %v310_v47, %v308_v46  ;;  %v311_v50 = vld [vmem:[%s2955_s24 + $0x60] sm:$0xff]  ;;  %v313_v51 = vld [vmem:[%s2955_s24 + $0x70] sm:$0xff]  ;;  %v312_v52 = vld [vmem:[%s2955_s24 + $0x68] sm:$0xff] }
  0x2d   : > { %858 = vmatpush.bf16.msra.mxu1 %v2374_v18  ;;  %1027 = vmatpush.bf16.msra.mxu2 %v2314_v19  ;;  %v314_v53 = vld [vmem:[%s2955_s24 + $0x78] sm:$0xff]  ;;  %v433_v54 = vpack.c.bf16 %v313_v51, %v311_v50  ;;  %v315_v56 = vld [vmem:[%s2955_s24 + $0x80] sm:$0xff]  ;;  %v317_v57 = vld [vmem:[%s2955_s24 + $0x90] sm:$0xff] }
  0x2e   : > { %1196 = vmatpush.bf16.msra.mxu3 %v2378_v22  ;;  %v434_v55 = vpack.c.bf16 %v314_v53, %v312_v52  ;;  %v316_v58 = vld [vmem:[%s2955_s24 + $0x88] sm:$0xff]  ;;  %v318_v59 = vld [vmem:[%s2955_s24 + $0x98] sm:$0xff]  ;;  %v435_v60 = vpack.c.bf16 %v317_v57, %v315_v56  ;;  %v319_v62 = vld [vmem:[%s2955_s24 + $0xa0] sm:$0xff] }
  0x2f   : > { %v436_v61 = vpack.c.bf16 %v318_v59, %v316_v58  ;;  %v321_v63 = vld [vmem:[%s2955_s24 + $0xb0] sm:$0xff]  ;;  %v320_v0 = vld [vmem:[%s2955_s24 + $0xa8] sm:$0xff]  ;;  %v322_v1 = vld [vmem:[%s2955_s24 + $0xb8] sm:$0xff] }
  0x30   : > { %690 = vmatpush.bf16.msra.mxu0 %v2302_v28  ;;  %v437_v2 = vpack.c.bf16 %v321_v63, %v319_v62  ;;  %v438_v3 = vpack.c.bf16 %v322_v1, %v320_v0  ;;  %v323_v4 = vld [vmem:[%s2955_s24 + $0xc0] sm:$0xff]  ;;  %v325_v5 = vld [vmem:[%s2955_s24 + $0xd0] sm:$0xff]  ;;  %v324_v6 = vld [vmem:[%s2955_s24 + $0xc8] sm:$0xff] }
  0x31   : > { %859 = vmatpush.bf16.msra.mxu1 %v2366_v29  ;;  %1028 = vmatpush.bf16.msra.mxu2 %v2306_v30  ;;  %v326_v7 = vld [vmem:[%s2955_s24 + $0xd8] sm:$0xff]  ;;  %v439_v8 = vpack.c.bf16 %v325_v5, %v323_v4  ;;  %v327_v10 = vld [vmem:[%s2955_s24 + $0xe0] sm:$0xff]  ;;  %v329_v11 = vld [vmem:[%s2955_s24 + $0xf0] sm:$0xff] }
  0x32   : > { %1197 = vmatpush.bf16.msra.mxu3 %v2370_v34  ;;  %v440_v9 = vpack.c.bf16 %v326_v7, %v324_v6  ;;  %v328_v12 = vld [vmem:[%s2955_s24 + $0xe8] sm:$0xff]  ;;  %v330_v13 = vld [vmem:[%s2955_s24 + $0xf8] sm:$0xff]  ;;  %v441_v14 = vpack.c.bf16 %v329_v11, %v327_v10  ;;  %v331_v16 = vld [vmem:[%s2955_s24 + $0x100] sm:$0xff] }
  0x33   : > { %691 = vmatmul.bf16.vlgmr.msra.gmra.mxu0 %v427_v36  ;;  %v442_v15 = vpack.c.bf16 %v330_v13, %v328_v12  ;;  %v333_v17 = vld [vmem:[%s2955_s24 + $0x110] sm:$0xff]  ;;  %v1363_v18 = vld [vmem:[%s3504_s2] sm:$0x3]  ;;  %v332_v19 = vld [vmem:[%s2955_s24 + $0x108] sm:$0xff] }
  0x34   : > { %860 = vmatmul.bf16.vlgmr.msra.gmra.mxu1 %v428_v37  ;;  %1029 = vmatmul.bf16.vlgmr.msra.gmra.mxu2 %v427_v36  ;;  %v334_v20 = vld [vmem:[%s2955_s24 + $0x118] sm:$0xff]  ;;  %v443_v21 = vpack.c.bf16 %v333_v17, %v331_v16  ;;  %v2997_v23 = vperm.slane %v1363_v18, 0  ;;  %v3003_v29 = vperm.slane %v1363_v18, 1  ;;  %v337_v38 = vld [vmem:[%s2955_s24 + $0x130] sm:$0xff]  ;;  %v336_v39 = vld [vmem:[%s2955_s24 + $0x128] sm:$0xff] }
  0x35   : > { %1198 = vmatmul.bf16.vlgmr.msra.gmra.mxu3 %v428_v37  ;;  %v444_v24 = vpack.c.bf16 %v334_v20, %v332_v19  ;;  %v335_v37 = vld [vmem:[%s2955_s24 + $0x120] sm:$0xff]  ;;  %v338_v40 = vld [vmem:[%s2955_s24 + $0x138] sm:$0xff]  ;;  %v345_v18 = vld [vmem:[%s2955_s24 + $0x170] sm:$0xff] }
  0x36   : > { %v446_v45 = vpack.c.bf16 %v338_v40, %v336_v39  ;;  %v339_v59 = vld [vmem:[%s2955_s24 + $0x140] sm:$0xff]  ;;  %v342_v62 = vld [vmem:[%s2955_s24 + $0x158] sm:$0xff]  ;;  %v344_v19 = vld [vmem:[%s2955_s24 + $0x168] sm:$0xff] }
  0x37   : > { %v343_v17 = vld [vmem:[%s2955_s24 + $0x160] sm:$0xff]  ;;  %v346_v20 = vld [vmem:[%s2955_s24 + $0x178] sm:$0xff] }
  0x43   : > { %696 = vmatmul.bf16.gmra.mxu0 %v429_v42 }
  0x44   : > { %865 = vmatmul.bf16.gmra.mxu1 %v430_v43  ;;  %1034 = vmatmul.bf16.gmra.mxu2 %v429_v42  ;;  %v445_v42 = vpack.c.bf16 %v337_v38, %v335_v37 }
  0x45   : > { %1203 = vmatmul.bf16.gmra.mxu3 %v430_v43 }
  0x53   : > { %701 = vmatmul.bf16.gmra.mxu0 %v431_v48 }
  0x54   : > { %870 = vmatmul.bf16.gmra.mxu1 %v432_v49  ;;  %1039 = vmatmul.bf16.gmra.mxu2 %v431_v48 }
  0x55   : > { %1208 = vmatmul.bf16.gmra.mxu3 %v432_v49 }
  0x63   : > { %706 = vmatmul.bf16.gmra.mxu0 %v433_v54 }
  0x64   : > { %875 = vmatmul.bf16.gmra.mxu1 %v434_v55  ;;  %1044 = vmatmul.bf16.gmra.mxu2 %v433_v54 }
  0x65   : > { %1213 = vmatmul.bf16.gmra.mxu3 %v434_v55 }
  0x73   : > { %711 = vmatmul.bf16.gmra.mxu0 %v435_v60 }
  0x74   : > { %880 = vmatmul.bf16.gmra.mxu1 %v436_v61  ;;  %1049 = vmatmul.bf16.gmra.mxu2 %v435_v60  ;;  %v341_v60 = vld [vmem:[%s2955_s24 + $0x150] sm:$0xff] }
  0x75   : > { %1218 = vmatmul.bf16.gmra.mxu3 %v436_v61  ;;  %v340_v61 = vld [vmem:[%s2955_s24 + $0x148] sm:$0xff]  ;;  %v447_v0 = vpack.c.bf16 %v341_v60, %v339_v59 }
  0x83   : > { %716 = vmatmul.bf16.gmra.mxu0 %v437_v2 }
  0x84   : > { %885 = vmatmul.bf16.gmra.mxu1 %v438_v3  ;;  %1054 = vmatmul.bf16.gmra.mxu2 %v437_v2 }
  0x85   : > { %1223 = vmatmul.bf16.gmra.mxu3 %v438_v3  ;;  %v448_v3 = vpack.c.bf16 %v342_v62, %v340_v61 }
  0x93   : > { %721 = vmatmul.bf16.gmra.mxu0 %v439_v8 }
  0x94   : > { %890 = vmatmul.bf16.gmra.mxu1 %v440_v9  ;;  %1059 = vmatmul.bf16.gmra.mxu2 %v439_v8 }
  0x95   : > { %1228 = vmatmul.bf16.gmra.mxu3 %v440_v9 }
  0xa3   : > { %726 = vmatmul.bf16.gmra.mxu0 %v441_v14 }
  0xa4   : > { %895 = vmatmul.bf16.gmra.mxu1 %v442_v15  ;;  %1064 = vmatmul.bf16.gmra.mxu2 %v441_v14 }
  0xa5   : > { %1233 = vmatmul.bf16.gmra.mxu3 %v442_v15 }
  0xb0   : > { %v692_v22 = vpop.f32.mrf.mxu0 }
  0xb1   : > { %v861_v25 = vpop.f32.mrf.mxu1 }
  0xb2   : > { %v862_v26 = vadd.f32 %v861_v25, %v692_v22  ;;  %v449_v22 = vpack.c.bf16 %v345_v18, %v343_v17 }
  0xb3   : > { %731 = vmatmul.bf16.gmra.mxu0 %v443_v21 }
  0xb4   : > { %v1369_v27 = vadd.f32 %v2997_v23, %v862_v26  ;;  %900 = vmatmul.bf16.gmra.mxu1 %v444_v24  ;;  %1069 = vmatmul.bf16.gmra.mxu2 %v443_v21  ;;  %v450_v26 = vpack.c.bf16 %v346_v20, %v344_v19 }
  0xb5   : > { %1238 = vmatmul.bf16.gmra.mxu3 %v444_v24 }
  0xb6   : > { %1497 = vst [vmem:[%s3000_s12] sm:$0xff] %v1369_v27 }
  0xb7   : > { %v1030_v28 = vpop.f32.mrf.mxu2 }
  0xb8   : > { %v1199_v30 = vpop.f32.mrf.mxu3  ;;  %v694_v31 = vpop.f32.mrf.mxu0 }
  0xb9   : > { %v1200_v32 = vadd.f32 %v1199_v30, %v1030_v28  ;;  %v863_v33 = vpop.f32.mrf.mxu1 }
  0xba   : > { %v864_v34 = vadd.f32 %v863_v33, %v694_v31 }
  0xbb   : > { %v1370_v35 = vadd.f32 %v3003_v29, %v1200_v32 }
  0xbc   : > { %v1371_v36 = vadd.f32 %v2997_v23, %v864_v34 }
  0xbd   : > { %1498 = vst [vmem:[%s3000_s12 + $0x8] sm:$0xff] %v1370_v35 }
  0xbe   : > { %1499 = vst [vmem:[%s3000_s12 + $0x10] sm:$0xff] %v1371_v36 }
  0xbf   : > { %v1032_v41 = vpop.f32.mrf.mxu2 }
  0xc0   : > { %v1201_v43 = vpop.f32.mrf.mxu3  ;;  %v697_v44 = vpop.f32.mrf.mxu0 }
  0xc1   : > { %v1202_v46 = vadd.f32 %v1201_v43, %v1032_v41  ;;  %v866_v47 = vpop.f32.mrf.mxu1  ;;  %v347_v41 = vld [vmem:[%s2955_s24 + $0x180] sm:$0xff]  ;;  %v348_v43 = vld [vmem:[%s2955_s24 + $0x188] sm:$0xff] }
  0xc2   : > { %v867_v48 = vadd.f32 %v866_v47, %v697_v44  ;;  %v350_v44 = vld [vmem:[%s2955_s24 + $0x198] sm:$0xff] }
  0xc3   : > { %v1372_v49 = vadd.f32 %v3003_v29, %v1202_v46  ;;  %736 = vmatmul.bf16.gmra.mxu0 %v445_v42 }
  0xc4   : > { %v1373_v50 = vadd.f32 %v2997_v23, %v867_v48  ;;  %905 = vmatmul.bf16.gmra.mxu1 %v446_v45  ;;  %1074 = vmatmul.bf16.gmra.mxu2 %v445_v42  ;;  %v349_v42 = vld [vmem:[%s2955_s24 + $0x190] sm:$0xff] }
  0xc5   : > { %1500 = vst [vmem:[%s3000_s12 + $0x18] sm:$0xff] %v1372_v49  ;;  %1243 = vmatmul.bf16.gmra.mxu3 %v446_v45  ;;  %v451_v46 = vpack.c.bf16 %v349_v42, %v347_v41  ;;  %v452_v49 = vpack.c.bf16 %v350_v44, %v348_v43 }
  0xc6   : > { %1501 = vst [vmem:[%s3000_s12 + $0x20] sm:$0xff] %v1373_v50 }
  0xc7   : > { %v1035_v51 = vpop.f32.mrf.mxu2 }
  0xc8   : > { %v1204_v52 = vpop.f32.mrf.mxu3  ;;  %v699_v53 = vpop.f32.mrf.mxu0 }
  0xc9   : > { %v1205_v54 = vadd.f32 %v1204_v52, %v1035_v51  ;;  %v868_v55 = vpop.f32.mrf.mxu1 }
  0xca   : > { %v869_v56 = vadd.f32 %v868_v55, %v699_v53 }
  0xcb   : > { %v1374_v57 = vadd.f32 %v3003_v29, %v1205_v54 }
  0xcc   : > { %v1375_v58 = vadd.f32 %v2997_v23, %v869_v56 }
  0xcd   : > { %1502 = vst [vmem:[%s3000_s12 + $0x28] sm:$0xff] %v1374_v57 }
  0xce   : > { %1503 = vst [vmem:[%s3000_s12 + $0x30] sm:$0xff] %v1375_v58 }
  0xcf   : > { %v1037_v63 = vpop.f32.mrf.mxu2 }
  0xd0   : > { %v1206_v1 = vpop.f32.mrf.mxu3  ;;  %v702_v2 = vpop.f32.mrf.mxu0 }
  0xd1   : > { %v1207_v4 = vadd.f32 %v1206_v1, %v1037_v63  ;;  %v871_v5 = vpop.f32.mrf.mxu1  ;;  %v351_v63 = vld [vmem:[%s2955_s24 + $0x1a0] sm:$0xff]  ;;  %v352_v1 = vld [vmem:[%s2955_s24 + $0x1a8] sm:$0xff] }
  0xd2   : > { %v872_v6 = vadd.f32 %v871_v5, %v702_v2  ;;  %v354_v2 = vld [vmem:[%s2955_s24 + $0x1b8] sm:$0xff] }
  0xd3   : > { %v1376_v7 = vadd.f32 %v3003_v29, %v1207_v4  ;;  %741 = vmatmul.bf16.gmra.mxu0 %v447_v0 }
  0xd4   : > { %v1377_v8 = vadd.f32 %v2997_v23, %v872_v6  ;;  %910 = vmatmul.bf16.gmra.mxu1 %v448_v3  ;;  %1079 = vmatmul.bf16.gmra.mxu2 %v447_v0  ;;  %v353_v0 = vld [vmem:[%s2955_s24 + $0x1b0] sm:$0xff] }
  0xd5   : > { %1504 = vst [vmem:[%s3000_s12 + $0x38] sm:$0xff] %v1376_v7  ;;  %1248 = vmatmul.bf16.gmra.mxu3 %v448_v3  ;;  %v453_v4 = vpack.c.bf16 %v353_v0, %v351_v63  ;;  %v454_v7 = vpack.c.bf16 %v354_v2, %v352_v1 }
  0xd6   : > { %1505 = vst [vmem:[%s3000_s12 + $0x40] sm:$0xff] %v1377_v8 }
  0xd7   : > { %v1040_v9 = vpop.f32.mrf.mxu2 }
  0xd8   : > { %v1209_v10 = vpop.f32.mrf.mxu3  ;;  %v704_v11 = vpop.f32.mrf.mxu0 }
  0xd9   : > { %v1210_v12 = vadd.f32 %v1209_v10, %v1040_v9  ;;  %v873_v13 = vpop.f32.mrf.mxu1 }
  0xda   : > { %v874_v14 = vadd.f32 %v873_v13, %v704_v11 }
  0xdb   : > { %v1378_v15 = vadd.f32 %v3003_v29, %v1210_v12 }
  0xdc   : > { %v1379_v16 = vadd.f32 %v2997_v23, %v874_v14 }
  0xdd   : > { %1506 = vst [vmem:[%s3000_s12 + $0x48] sm:$0xff] %v1378_v15 }
  0xde   : > { %1507 = vst [vmem:[%s3000_s12 + $0x50] sm:$0xff] %v1379_v16 }
  0xdf   : > { %v1042_v21 = vpop.f32.mrf.mxu2 }
  0xe0   : > { %v1211_v24 = vpop.f32.mrf.mxu3  ;;  %v707_v25 = vpop.f32.mrf.mxu0 }
  0xe1   : > { %v1212_v27 = vadd.f32 %v1211_v24, %v1042_v21  ;;  %v876_v28 = vpop.f32.mrf.mxu1  ;;  %v355_v21 = vld [vmem:[%s2955_s24 + $0x1c0] sm:$0xff]  ;;  %v356_v24 = vld [vmem:[%s2955_s24 + $0x1c8] sm:$0xff] }
  0xe2   : > { %v877_v30 = vadd.f32 %v876_v28, %v707_v25  ;;  %v358_v25 = vld [vmem:[%s2955_s24 + $0x1d8] sm:$0xff] }
  0xe3   : > { %v1380_v31 = vadd.f32 %v3003_v29, %v1212_v27  ;;  %746 = vmatmul.bf16.gmra.mxu0 %v449_v22 }
  0xe4   : > { %v1381_v32 = vadd.f32 %v2997_v23, %v877_v30  ;;  %915 = vmatmul.bf16.gmra.mxu1 %v450_v26  ;;  %1084 = vmatmul.bf16.gmra.mxu2 %v449_v22  ;;  %v357_v22 = vld [vmem:[%s2955_s24 + $0x1d0] sm:$0xff] }
  0xe5   : > { %1508 = vst [vmem:[%s3000_s12 + $0x58] sm:$0xff] %v1380_v31  ;;  %1253 = vmatmul.bf16.gmra.mxu3 %v450_v26  ;;  %v455_v27 = vpack.c.bf16 %v357_v22, %v355_v21  ;;  %v456_v31 = vpack.c.bf16 %v358_v25, %v356_v24 }
  0xe6   : > { %1509 = vst [vmem:[%s3000_s12 + $0x60] sm:$0xff] %v1381_v32 }
  0xe7   : > { %v1045_v33 = vpop.f32.mrf.mxu2 }
  0xe8   : > { %v1214_v34 = vpop.f32.mrf.mxu3  ;;  %v709_v35 = vpop.f32.mrf.mxu0 }
  0xe9   : > { %v1215_v36 = vadd.f32 %v1214_v34, %v1045_v33  ;;  %v878_v37 = vpop.f32.mrf.mxu1 }
  0xea   : > { %v879_v38 = vadd.f32 %v878_v37, %v709_v35 }
  0xeb   : > { %v1382_v39 = vadd.f32 %v3003_v29, %v1215_v36 }
  0xec   : > { %v1383_v40 = vadd.f32 %v2997_v23, %v879_v38 }
  0xed   : > { %1510 = vst [vmem:[%s3000_s12 + $0x68] sm:$0xff] %v1382_v39 }
  0xee   : > { %1511 = vst [vmem:[%s3000_s12 + $0x70] sm:$0xff] %v1383_v40 }
  0xef   : > { %v1047_v45 = vpop.f32.mrf.mxu2 }
  0xf0   : > { %v1216_v47 = vpop.f32.mrf.mxu3  ;;  %v712_v48 = vpop.f32.mrf.mxu0 }
  0xf1   : > { %v1217_v50 = vadd.f32 %v1216_v47, %v1047_v45  ;;  %v881_v51 = vpop.f32.mrf.mxu1  ;;  %v359_v45 = vld [vmem:[%s2955_s24 + $0x1e0] sm:$0xff]  ;;  %v360_v47 = vld [vmem:[%s2955_s24 + $0x1e8] sm:$0xff] }
  0xf2   : > { %v882_v52 = vadd.f32 %v881_v51, %v712_v48  ;;  %v362_v48 = vld [vmem:[%s2955_s24 + $0x1f8] sm:$0xff] }
  0xf3   : > { %v1384_v53 = vadd.f32 %v3003_v29, %v1217_v50  ;;  %751 = vmatmul.bf16.gmra.mxu0 %v451_v46 }
  0xf4   : > { %v1385_v54 = vadd.f32 %v2997_v23, %v882_v52  ;;  %920 = vmatmul.bf16.gmra.mxu1 %v452_v49  ;;  %1089 = vmatmul.bf16.gmra.mxu2 %v451_v46  ;;  %v361_v46 = vld [vmem:[%s2955_s24 + $0x1f0] sm:$0xff] }
  0xf5   : > { %1512 = vst [vmem:[%s3000_s12 + $0x78] sm:$0xff] %v1384_v53  ;;  %1258 = vmatmul.bf16.gmra.mxu3 %v452_v49  ;;  %v457_v50 = vpack.c.bf16 %v361_v46, %v359_v45  ;;  %v458_v53 = vpack.c.bf16 %v362_v48, %v360_v47 }
  0xf6   : > { %1513 = vst [vmem:[%s3000_s12 + $0x80] sm:$0xff] %v1385_v54 }
  0xf7   : > { %v1050_v55 = vpop.f32.mrf.mxu2 }
  0xf8   : > { %v1219_v56 = vpop.f32.mrf.mxu3  ;;  %v714_v57 = vpop.f32.mrf.mxu0 }
  0xf9   : > { %v1220_v58 = vadd.f32 %v1219_v56, %v1050_v55  ;;  %v883_v59 = vpop.f32.mrf.mxu1 }
  0xfa   : > { %v884_v60 = vadd.f32 %v883_v59, %v714_v57 }
  0xfb   : > { %v1386_v61 = vadd.f32 %v3003_v29, %v1220_v58 }
  0xfc   : > { %v1387_v62 = vadd.f32 %v2997_v23, %v884_v60 }
  0xfd   : > { %1514 = vst [vmem:[%s3000_s12 + $0x88] sm:$0xff] %v1386_v61 }
  0xfe   : > { %1515 = vst [vmem:[%s3000_s12 + $0x90] sm:$0xff] %v1387_v62 }
  0xff   : > { %v1052_v3 = vpop.f32.mrf.mxu2 }
 0x100   : > { %v1221_v5 = vpop.f32.mrf.mxu3  ;;  %v717_v6 = vpop.f32.mrf.mxu0 }
 0x101   : > { %v1222_v8 = vadd.f32 %v1221_v5, %v1052_v3  ;;  %v886_v9 = vpop.f32.mrf.mxu1  ;;  %v363_v3 = vld [vmem:[%s2955_s24 + $0x200] sm:$0xff]  ;;  %v364_v5 = vld [vmem:[%s2955_s24 + $0x208] sm:$0xff] }
 0x102   : > { %v887_v10 = vadd.f32 %v886_v9, %v717_v6  ;;  %v366_v6 = vld [vmem:[%s2955_s24 + $0x218] sm:$0xff] }
 0x103   : > { %v1388_v11 = vadd.f32 %v3003_v29, %v1222_v8  ;;  %756 = vmatmul.bf16.gmra.mxu0 %v453_v4 }
 0x104   : > { %v1389_v12 = vadd.f32 %v2997_v23, %v887_v10  ;;  %925 = vmatmul.bf16.gmra.mxu1 %v454_v7  ;;  %1094 = vmatmul.bf16.gmra.mxu2 %v453_v4  ;;  %v365_v4 = vld [vmem:[%s2955_s24 + $0x210] sm:$0xff] }
 0x105   : > { %1516 = vst [vmem:[%s3000_s12 + $0x98] sm:$0xff] %v1388_v11  ;;  %1263 = vmatmul.bf16.gmra.mxu3 %v454_v7  ;;  %v459_v8 = vpack.c.bf16 %v365_v4, %v363_v3  ;;  %v460_v11 = vpack.c.bf16 %v366_v6, %v364_v5 }
 0x106   : > { %1517 = vst [vmem:[%s3000_s12 + $0xa0] sm:$0xff] %v1389_v12 }
 0x107   : > { %v1055_v13 = vpop.f32.mrf.mxu2 }
 0x108   : > { %v1224_v14 = vpop.f32.mrf.mxu3  ;;  %v719_v15 = vpop.f32.mrf.mxu0 }
 0x109   : > { %v1225_v16 = vadd.f32 %v1224_v14, %v1055_v13  ;;  %v888_v17 = vpop.f32.mrf.mxu1 }
 0x10a   : > { %v889_v18 = vadd.f32 %v888_v17, %v719_v15 }
 0x10b   : > { %v1390_v19 = vadd.f32 %v3003_v29, %v1225_v16 }
 0x10c   : > { %v1391_v20 = vadd.f32 %v2997_v23, %v889_v18 }
 0x10d   : > { %1518 = vst [vmem:[%s3000_s12 + $0xa8] sm:$0xff] %v1390_v19 }
 0x10e   : > { %1519 = vst [vmem:[%s3000_s12 + $0xb0] sm:$0xff] %v1391_v20 }
 0x10f   : > { %v1057_v26 = vpop.f32.mrf.mxu2 }
 0x110   : > { %v1226_v28 = vpop.f32.mrf.mxu3  ;;  %v722_v30 = vpop.f32.mrf.mxu0 }
 0x111   : > { %v1227_v32 = vadd.f32 %v1226_v28, %v1057_v26  ;;  %v891_v33 = vpop.f32.mrf.mxu1  ;;  %v367_v26 = vld [vmem:[%s2955_s24 + $0x220] sm:$0xff]  ;;  %v368_v28 = vld [vmem:[%s2955_s24 + $0x228] sm:$0xff] }
 0x112   : > { %v892_v34 = vadd.f32 %v891_v33, %v722_v30  ;;  %v370_v30 = vld [vmem:[%s2955_s24 + $0x238] sm:$0xff] }
 0x113   : > { %v1392_v35 = vadd.f32 %v3003_v29, %v1227_v32  ;;  %761 = vmatmul.bf16.gmra.mxu0 %v455_v27 }
 0x114   : > { %v1393_v36 = vadd.f32 %v2997_v23, %v892_v34  ;;  %930 = vmatmul.bf16.gmra.mxu1 %v456_v31  ;;  %1099 = vmatmul.bf16.gmra.mxu2 %v455_v27  ;;  %v369_v27 = vld [vmem:[%s2955_s24 + $0x230] sm:$0xff] }
 0x115   : > { %1520 = vst [vmem:[%s3000_s12 + $0xb8] sm:$0xff] %v1392_v35  ;;  %1268 = vmatmul.bf16.gmra.mxu3 %v456_v31  ;;  %v461_v32 = vpack.c.bf16 %v369_v27, %v367_v26  ;;  %v462_v35 = vpack.c.bf16 %v370_v30, %v368_v28 }
 0x116   : > { %1521 = vst [vmem:[%s3000_s12 + $0xc0] sm:$0xff] %v1393_v36 }
 0x117   : > { %v1060_v37 = vpop.f32.mrf.mxu2 }
 0x118   : > { %v1229_v38 = vpop.f32.mrf.mxu3  ;;  %v724_v39 = vpop.f32.mrf.mxu0 }
 0x119   : > { %v1230_v40 = vadd.f32 %v1229_v38, %v1060_v37  ;;  %v893_v41 = vpop.f32.mrf.mxu1 }
 0x11a   : > { %v894_v42 = vadd.f32 %v893_v41, %v724_v39 }
 0x11b   : > { %v1394_v43 = vadd.f32 %v3003_v29, %v1230_v40 }
 0x11c   : > { %v1395_v44 = vadd.f32 %v2997_v23, %v894_v42 }
 0x11d   : > { %1522 = vst [vmem:[%s3000_s12 + $0xc8] sm:$0xff] %v1394_v43 }
 0x11e   : > { %1523 = vst [vmem:[%s3000_s12 + $0xd0] sm:$0xff] %v1395_v44 }
 0x11f   : > { %v1062_v49 = vpop.f32.mrf.mxu2 }
 0x120   : > { %v1231_v51 = vpop.f32.mrf.mxu3  ;;  %v727_v52 = vpop.f32.mrf.mxu0 }
 0x121   : > { %v1232_v54 = vadd.f32 %v1231_v51, %v1062_v49  ;;  %v896_v55 = vpop.f32.mrf.mxu1  ;;  %v371_v49 = vld [vmem:[%s2955_s24 + $0x240] sm:$0xff]  ;;  %v372_v51 = vld [vmem:[%s2955_s24 + $0x248] sm:$0xff] }
 0x122   : > { %v897_v56 = vadd.f32 %v896_v55, %v727_v52  ;;  %v374_v52 = vld [vmem:[%s2955_s24 + $0x258] sm:$0xff] }
 0x123   : > { %v1396_v57 = vadd.f32 %v3003_v29, %v1232_v54  ;;  %766 = vmatmul.bf16.gmra.mxu0 %v457_v50 }
 0x124   : > { %v1397_v58 = vadd.f32 %v2997_v23, %v897_v56  ;;  %935 = vmatmul.bf16.gmra.mxu1 %v458_v53  ;;  %1104 = vmatmul.bf16.gmra.mxu2 %v457_v50  ;;  %v373_v50 = vld [vmem:[%s2955_s24 + $0x250] sm:$0xff] }
 0x125   : > { %1524 = vst [vmem:[%s3000_s12 + $0xd8] sm:$0xff] %v1396_v57  ;;  %1273 = vmatmul.bf16.gmra.mxu3 %v458_v53  ;;  %v463_v54 = vpack.c.bf16 %v373_v50, %v371_v49  ;;  %v464_v57 = vpack.c.bf16 %v374_v52, %v372_v51 }
 0x126   : > { %1525 = vst [vmem:[%s3000_s12 + $0xe0] sm:$0xff] %v1397_v58 }
 0x127   : > { %v1065_v59 = vpop.f32.mrf.mxu2 }
 0x128   : > { %v1234_v60 = vpop.f32.mrf.mxu3  ;;  %v729_v61 = vpop.f32.mrf.mxu0 }
 0x129   : > { %v1235_v62 = vadd.f32 %v1234_v60, %v1065_v59  ;;  %v898_v63 = vpop.f32.mrf.mxu1 }
 0x12a   : > { %v899_v0 = vadd.f32 %v898_v63, %v729_v61 }
 0x12b   : > { %v1398_v1 = vadd.f32 %v3003_v29, %v1235_v62 }
 0x12c   : > { %v1399_v2 = vadd.f32 %v2997_v23, %v899_v0 }
 0x12d   : > { %1526 = vst [vmem:[%s3000_s12 + $0xe8] sm:$0xff] %v1398_v1 }
 0x12e   : > { %1527 = vst [vmem:[%s3000_s12 + $0xf0] sm:$0xff] %v1399_v2 }
 0x12f   : > { %v1067_v7 = vpop.f32.mrf.mxu2 }
 0x130   : > { %v1236_v9 = vpop.f32.mrf.mxu3  ;;  %v732_v10 = vpop.f32.mrf.mxu0 }
 0x131   : > { %v1237_v12 = vadd.f32 %v1236_v9, %v1067_v7  ;;  %v901_v13 = vpop.f32.mrf.mxu1  ;;  %v375_v7 = vld [vmem:[%s2955_s24 + $0x260] sm:$0xff]  ;;  %v376_v9 = vld [vmem:[%s2955_s24 + $0x268] sm:$0xff] }
 0x132   : > { %v902_v14 = vadd.f32 %v901_v13, %v732_v10  ;;  %v378_v10 = vld [vmem:[%s2955_s24 + $0x278] sm:$0xff] }
 0x133   : > { %v1400_v15 = vadd.f32 %v3003_v29, %v1237_v12  ;;  %771 = vmatmul.bf16.gmra.mxu0 %v459_v8 }
 0x134   : > { %v1401_v16 = vadd.f32 %v2997_v23, %v902_v14  ;;  %940 = vmatmul.bf16.gmra.mxu1 %v460_v11  ;;  %1109 = vmatmul.bf16.gmra.mxu2 %v459_v8  ;;  %v377_v8 = vld [vmem:[%s2955_s24 + $0x270] sm:$0xff] }
 0x135   : > { %1528 = vst [vmem:[%s3000_s12 + $0xf8] sm:$0xff] %v1400_v15  ;;  %1278 = vmatmul.bf16.gmra.mxu3 %v460_v11  ;;  %v465_v12 = vpack.c.bf16 %v377_v8, %v375_v7  ;;  %v466_v15 = vpack.c.bf16 %v378_v10, %v376_v9 }
 0x136   : > { %1529 = vst [vmem:[%s3000_s12 + $0x100] sm:$0xff] %v1401_v16 }
 0x137   : > { %v1070_v17 = vpop.f32.mrf.mxu2 }
 0x138   : > { %v1239_v18 = vpop.f32.mrf.mxu3  ;;  %v734_v19 = vpop.f32.mrf.mxu0 }
 0x139   : > { %v1240_v20 = vadd.f32 %v1239_v18, %v1070_v17  ;;  %v903_v21 = vpop.f32.mrf.mxu1 }
 0x13a   : > { %v904_v22 = vadd.f32 %v903_v21, %v734_v19 }
 0x13b   : > { %v1402_v24 = vadd.f32 %v3003_v29, %v1240_v20 }
 0x13c   : > { %v1403_v25 = vadd.f32 %v2997_v23, %v904_v22 }
 0x13d   : > { %1530 = vst [vmem:[%s3000_s12 + $0x108] sm:$0xff] %v1402_v24 }
 0x13e   : > { %1531 = vst [vmem:[%s3000_s12 + $0x110] sm:$0xff] %v1403_v25 }
 0x13f   : > { %v1072_v31 = vpop.f32.mrf.mxu2 }
 0x140   : > { %v1241_v33 = vpop.f32.mrf.mxu3  ;;  %v737_v34 = vpop.f32.mrf.mxu0 }
 0x141   : > { %v1242_v36 = vadd.f32 %v1241_v33, %v1072_v31  ;;  %v906_v37 = vpop.f32.mrf.mxu1  ;;  %v379_v31 = vld [vmem:[%s2955_s24 + $0x280] sm:$0xff]  ;;  %v380_v33 = vld [vmem:[%s2955_s24 + $0x288] sm:$0xff] }
 0x142   : > { %v907_v38 = vadd.f32 %v906_v37, %v737_v34  ;;  %v382_v34 = vld [vmem:[%s2955_s24 + $0x298] sm:$0xff] }
 0x143   : > { %v1404_v39 = vadd.f32 %v3003_v29, %v1242_v36  ;;  %776 = vmatmul.bf16.gmra.mxu0 %v461_v32 }
 0x144   : > { %v1405_v40 = vadd.f32 %v2997_v23, %v907_v38  ;;  %945 = vmatmul.bf16.gmra.mxu1 %v462_v35  ;;  %1114 = vmatmul.bf16.gmra.mxu2 %v461_v32  ;;  %v381_v32 = vld [vmem:[%s2955_s24 + $0x290] sm:$0xff] }
 0x145   : > { %1532 = vst [vmem:[%s3000_s12 + $0x118] sm:$0xff] %v1404_v39  ;;  %1283 = vmatmul.bf16.gmra.mxu3 %v462_v35  ;;  %v467_v36 = vpack.c.bf16 %v381_v32, %v379_v31  ;;  %v468_v39 = vpack.c.bf16 %v382_v34, %v380_v33 }
 0x146   : > { %1533 = vst [vmem:[%s3000_s12 + $0x120] sm:$0xff] %v1405_v40 }
 0x147   : > { %v1075_v41 = vpop.f32.mrf.mxu2 }
 0x148   : > { %v1244_v42 = vpop.f32.mrf.mxu3  ;;  %v739_v43 = vpop.f32.mrf.mxu0 }
 0x149   : > { %v1245_v44 = vadd.f32 %v1244_v42, %v1075_v41  ;;  %v908_v45 = vpop.f32.mrf.mxu1 }
 0x14a   : > { %v909_v46 = vadd.f32 %v908_v45, %v739_v43 }
 0x14b   : > { %v1406_v47 = vadd.f32 %v3003_v29, %v1245_v44 }
 0x14c   : > { %v1407_v48 = vadd.f32 %v2997_v23, %v909_v46 }
 0x14d   : > { %1534 = vst [vmem:[%s3000_s12 + $0x128] sm:$0xff] %v1406_v47 }
 0x14e   : > { %1535 = vst [vmem:[%s3000_s12 + $0x130] sm:$0xff] %v1407_v48 }
 0x14f   : > { %v1077_v53 = vpop.f32.mrf.mxu2 }
 0x150   : > { %v1246_v55 = vpop.f32.mrf.mxu3  ;;  %v742_v56 = vpop.f32.mrf.mxu0 }
 0x151   : > { %v1247_v58 = vadd.f32 %v1246_v55, %v1077_v53  ;;  %v911_v59 = vpop.f32.mrf.mxu1  ;;  %v383_v53 = vld [vmem:[%s2955_s24 + $0x2a0] sm:$0xff]  ;;  %v384_v55 = vld [vmem:[%s2955_s24 + $0x2a8] sm:$0xff] }
 0x152   : > { %v912_v60 = vadd.f32 %v911_v59, %v742_v56  ;;  %v386_v56 = vld [vmem:[%s2955_s24 + $0x2b8] sm:$0xff] }
 0x153   : > { %v1408_v61 = vadd.f32 %v3003_v29, %v1247_v58  ;;  %781 = vmatmul.bf16.gmra.mxu0 %v463_v54 }
 0x154   : > { %v1409_v62 = vadd.f32 %v2997_v23, %v912_v60  ;;  %950 = vmatmul.bf16.gmra.mxu1 %v464_v57  ;;  %1119 = vmatmul.bf16.gmra.mxu2 %v463_v54  ;;  %v385_v54 = vld [vmem:[%s2955_s24 + $0x2b0] sm:$0xff] }
 0x155   : > { %1536 = vst [vmem:[%s3000_s12 + $0x138] sm:$0xff] %v1408_v61  ;;  %1288 = vmatmul.bf16.gmra.mxu3 %v464_v57  ;;  %v469_v58 = vpack.c.bf16 %v385_v54, %v383_v53  ;;  %v470_v61 = vpack.c.bf16 %v386_v56, %v384_v55 }
 0x156   : > { %1537 = vst [vmem:[%s3000_s12 + $0x140] sm:$0xff] %v1409_v62 }
 0x157   : > { %v1080_v63 = vpop.f32.mrf.mxu2 }
 0x158   : > { %v1249_v0 = vpop.f32.mrf.mxu3  ;;  %v744_v1 = vpop.f32.mrf.mxu0 }
 0x159   : > { %v1250_v2 = vadd.f32 %v1249_v0, %v1080_v63  ;;  %v913_v3 = vpop.f32.mrf.mxu1 }
 0x15a   : > { %v914_v4 = vadd.f32 %v913_v3, %v744_v1 }
 0x15b   : > { %v1410_v5 = vadd.f32 %v3003_v29, %v1250_v2 }
 0x15c   : > { %v1411_v6 = vadd.f32 %v2997_v23, %v914_v4 }
 0x15d   : > { %1538 = vst [vmem:[%s3000_s12 + $0x148] sm:$0xff] %v1410_v5 }
 0x15e   : > { %1539 = vst [vmem:[%s3000_s12 + $0x150] sm:$0xff] %v1411_v6 }
 0x15f   : > { %v1082_v11 = vpop.f32.mrf.mxu2 }
 0x160   : > { %v1251_v13 = vpop.f32.mrf.mxu3  ;;  %v747_v14 = vpop.f32.mrf.mxu0 }
 0x161   : > { %v1252_v16 = vadd.f32 %v1251_v13, %v1082_v11  ;;  %v916_v17 = vpop.f32.mrf.mxu1  ;;  %v387_v11 = vld [vmem:[%s2955_s24 + $0x2c0] sm:$0xff]  ;;  %v388_v13 = vld [vmem:[%s2955_s24 + $0x2c8] sm:$0xff] }
 0x162   : > { %v917_v18 = vadd.f32 %v916_v17, %v747_v14  ;;  %v390_v14 = vld [vmem:[%s2955_s24 + $0x2d8] sm:$0xff] }
 0x163   : > { %v1412_v19 = vadd.f32 %v3003_v29, %v1252_v16  ;;  %786 = vmatmul.bf16.gmra.mxu0 %v465_v12 }
 0x164   : > { %v1413_v20 = vadd.f32 %v2997_v23, %v917_v18  ;;  %955 = vmatmul.bf16.gmra.mxu1 %v466_v15  ;;  %1124 = vmatmul.bf16.gmra.mxu2 %v465_v12  ;;  %v389_v12 = vld [vmem:[%s2955_s24 + $0x2d0] sm:$0xff] }
 0x165   : > { %1540 = vst [vmem:[%s3000_s12 + $0x158] sm:$0xff] %v1412_v19  ;;  %1293 = vmatmul.bf16.gmra.mxu3 %v466_v15  ;;  %v471_v16 = vpack.c.bf16 %v389_v12, %v387_v11  ;;  %v472_v19 = vpack.c.bf16 %v390_v14, %v388_v13 }
 0x166   : > { %1541 = vst [vmem:[%s3000_s12 + $0x160] sm:$0xff] %v1413_v20 }
 0x167   : > { %v1085_v21 = vpop.f32.mrf.mxu2 }
 0x168   : > { %v1254_v22 = vpop.f32.mrf.mxu3  ;;  %v749_v24 = vpop.f32.mrf.mxu0 }
 0x169   : > { %v1255_v25 = vadd.f32 %v1254_v22, %v1085_v21  ;;  %v918_v26 = vpop.f32.mrf.mxu1 }
 0x16a   : > { %v919_v27 = vadd.f32 %v918_v26, %v749_v24 }
 0x16b   : > { %v1414_v28 = vadd.f32 %v3003_v29, %v1255_v25 }
 0x16c   : > { %v1415_v30 = vadd.f32 %v2997_v23, %v919_v27 }
 0x16d   : > { %1542 = vst [vmem:[%s3000_s12 + $0x168] sm:$0xff] %v1414_v28 }
 0x16e   : > { %1543 = vst [vmem:[%s3000_s12 + $0x170] sm:$0xff] %v1415_v30 }
 0x16f   : > { %v1087_v35 = vpop.f32.mrf.mxu2 }
 0x170   : > { %v1256_v37 = vpop.f32.mrf.mxu3  ;;  %v752_v38 = vpop.f32.mrf.mxu0 }
 0x171   : > { %v1257_v40 = vadd.f32 %v1256_v37, %v1087_v35  ;;  %v921_v41 = vpop.f32.mrf.mxu1  ;;  %v391_v35 = vld [vmem:[%s2955_s24 + $0x2e0] sm:$0xff]  ;;  %v392_v37 = vld [vmem:[%s2955_s24 + $0x2e8] sm:$0xff] }
 0x172   : > { %v922_v42 = vadd.f32 %v921_v41, %v752_v38  ;;  %v394_v38 = vld [vmem:[%s2955_s24 + $0x2f8] sm:$0xff] }
 0x173   : > { %v1416_v43 = vadd.f32 %v3003_v29, %v1257_v40  ;;  %791 = vmatmul.bf16.gmra.mxu0 %v467_v36 }
 0x174   : > { %v1417_v44 = vadd.f32 %v2997_v23, %v922_v42  ;;  %960 = vmatmul.bf16.gmra.mxu1 %v468_v39  ;;  %1129 = vmatmul.bf16.gmra.mxu2 %v467_v36  ;;  %v393_v36 = vld [vmem:[%s2955_s24 + $0x2f0] sm:$0xff] }
 0x175   : > { %1544 = vst [vmem:[%s3000_s12 + $0x178] sm:$0xff] %v1416_v43  ;;  %1298 = vmatmul.bf16.gmra.mxu3 %v468_v39  ;;  %v473_v40 = vpack.c.bf16 %v393_v36, %v391_v35  ;;  %v474_v43 = vpack.c.bf16 %v394_v38, %v392_v37 }
 0x176   : > { %1545 = vst [vmem:[%s3000_s12 + $0x180] sm:$0xff] %v1417_v44 }
 0x177   : > { %v1090_v45 = vpop.f32.mrf.mxu2 }
 0x178   : > { %v1259_v46 = vpop.f32.mrf.mxu3  ;;  %v754_v47 = vpop.f32.mrf.mxu0 }
 0x179   : > { %v1260_v48 = vadd.f32 %v1259_v46, %v1090_v45  ;;  %v923_v49 = vpop.f32.mrf.mxu1 }
 0x17a   : > { %v924_v50 = vadd.f32 %v923_v49, %v754_v47 }
 0x17b   : > { %v1418_v51 = vadd.f32 %v3003_v29, %v1260_v48 }
 0x17c   : > { %v1419_v52 = vadd.f32 %v2997_v23, %v924_v50 }
 0x17d   : > { %1546 = vst [vmem:[%s3000_s12 + $0x188] sm:$0xff] %v1418_v51 }
 0x17e   : > { %1547 = vst [vmem:[%s3000_s12 + $0x190] sm:$0xff] %v1419_v52 }
 0x17f   : > { %v1092_v57 = vpop.f32.mrf.mxu2 }
 0x180   : > { %v1261_v59 = vpop.f32.mrf.mxu3  ;;  %v757_v60 = vpop.f32.mrf.mxu0 }
 0x181   : > { %v1262_v62 = vadd.f32 %v1261_v59, %v1092_v57  ;;  %v926_v63 = vpop.f32.mrf.mxu1  ;;  %v395_v57 = vld [vmem:[%s2955_s24 + $0x300] sm:$0xff]  ;;  %v396_v59 = vld [vmem:[%s2955_s24 + $0x308] sm:$0xff] }
 0x182   : > { %v927_v0 = vadd.f32 %v926_v63, %v757_v60  ;;  %v398_v60 = vld [vmem:[%s2955_s24 + $0x318] sm:$0xff] }
 0x183   : > { %v1420_v1 = vadd.f32 %v3003_v29, %v1262_v62  ;;  %796 = vmatmul.bf16.gmra.mxu0 %v469_v58 }
 0x184   : > { %v1421_v2 = vadd.f32 %v2997_v23, %v927_v0  ;;  %965 = vmatmul.bf16.gmra.mxu1 %v470_v61  ;;  %1134 = vmatmul.bf16.gmra.mxu2 %v469_v58  ;;  %v397_v58 = vld [vmem:[%s2955_s24 + $0x310] sm:$0xff] }
 0x185   : > { %1548 = vst [vmem:[%s3000_s12 + $0x198] sm:$0xff] %v1420_v1  ;;  %1303 = vmatmul.bf16.gmra.mxu3 %v470_v61  ;;  %v475_v62 = vpack.c.bf16 %v397_v58, %v395_v57  ;;  %v476_v1 = vpack.c.bf16 %v398_v60, %v396_v59 }
 0x186   : > { %1549 = vst [vmem:[%s3000_s12 + $0x1a0] sm:$0xff] %v1421_v2 }
 0x187   : > { %v1095_v3 = vpop.f32.mrf.mxu2 }
 0x188   : > { %v1264_v4 = vpop.f32.mrf.mxu3  ;;  %v759_v5 = vpop.f32.mrf.mxu0 }
 0x189   : > { %v1265_v6 = vadd.f32 %v1264_v4, %v1095_v3  ;;  %v928_v7 = vpop.f32.mrf.mxu1 }
 0x18a   : > { %v929_v8 = vadd.f32 %v928_v7, %v759_v5 }
 0x18b   : > { %v1422_v9 = vadd.f32 %v3003_v29, %v1265_v6 }
 0x18c   : > { %v1423_v10 = vadd.f32 %v2997_v23, %v929_v8 }
 0x18d   : > { %1550 = vst [vmem:[%s3000_s12 + $0x1a8] sm:$0xff] %v1422_v9 }
 0x18e   : > { %1551 = vst [vmem:[%s3000_s12 + $0x1b0] sm:$0xff] %v1423_v10 }
 0x18f   : > { %v1097_v15 = vpop.f32.mrf.mxu2 }
 0x190   : > { %v1266_v17 = vpop.f32.mrf.mxu3  ;;  %v762_v18 = vpop.f32.mrf.mxu0 }
 0x191   : > { %v1267_v20 = vadd.f32 %v1266_v17, %v1097_v15  ;;  %v931_v21 = vpop.f32.mrf.mxu1  ;;  %v399_v15 = vld [vmem:[%s2955_s24 + $0x320] sm:$0xff]  ;;  %v400_v17 = vld [vmem:[%s2955_s24 + $0x328] sm:$0xff] }
 0x192   : > { %v932_v22 = vadd.f32 %v931_v21, %v762_v18  ;;  %v402_v18 = vld [vmem:[%s2955_s24 + $0x338] sm:$0xff] }
 0x193   : > { %v1424_v24 = vadd.f32 %v3003_v29, %v1267_v20  ;;  %801 = vmatmul.bf16.gmra.mxu0 %v471_v16 }
 0x194   : > { %v1425_v25 = vadd.f32 %v2997_v23, %v932_v22  ;;  %970 = vmatmul.bf16.gmra.mxu1 %v472_v19  ;;  %1139 = vmatmul.bf16.gmra.mxu2 %v471_v16  ;;  %v401_v16 = vld [vmem:[%s2955_s24 + $0x330] sm:$0xff] }
 0x195   : > { %1552 = vst [vmem:[%s3000_s12 + $0x1b8] sm:$0xff] %v1424_v24  ;;  %1308 = vmatmul.bf16.gmra.mxu3 %v472_v19  ;;  %v477_v20 = vpack.c.bf16 %v401_v16, %v399_v15  ;;  %v478_v24 = vpack.c.bf16 %v402_v18, %v400_v17 }
 0x196   : > { %1553 = vst [vmem:[%s3000_s12 + $0x1c0] sm:$0xff] %v1425_v25 }
 0x197   : > { %v1100_v26 = vpop.f32.mrf.mxu2 }
 0x198   : > { %v1269_v27 = vpop.f32.mrf.mxu3  ;;  %v764_v28 = vpop.f32.mrf.mxu0 }
 0x199   : > { %v1270_v30 = vadd.f32 %v1269_v27, %v1100_v26  ;;  %v933_v31 = vpop.f32.mrf.mxu1 }
 0x19a   : > { %v934_v32 = vadd.f32 %v933_v31, %v764_v28 }
 0x19b   : > { %v1426_v33 = vadd.f32 %v3003_v29, %v1270_v30 }
 0x19c   : > { %v1427_v34 = vadd.f32 %v2997_v23, %v934_v32 }
 0x19d   : > { %1554 = vst [vmem:[%s3000_s12 + $0x1c8] sm:$0xff] %v1426_v33 }
 0x19e   : > { %1555 = vst [vmem:[%s3000_s12 + $0x1d0] sm:$0xff] %v1427_v34 }
 0x19f   : > { %v1102_v39 = vpop.f32.mrf.mxu2 }
 0x1a0   : > { %v1271_v41 = vpop.f32.mrf.mxu3  ;;  %v767_v42 = vpop.f32.mrf.mxu0 }
 0x1a1   : > { %v1272_v44 = vadd.f32 %v1271_v41, %v1102_v39  ;;  %v936_v45 = vpop.f32.mrf.mxu1  ;;  %v403_v39 = vld [vmem:[%s2955_s24 + $0x340] sm:$0xff]  ;;  %v404_v41 = vld [vmem:[%s2955_s24 + $0x348] sm:$0xff] }
 0x1a2   : > { %v937_v46 = vadd.f32 %v936_v45, %v767_v42  ;;  %v406_v42 = vld [vmem:[%s2955_s24 + $0x358] sm:$0xff] }
 0x1a3   : > { %v1428_v47 = vadd.f32 %v3003_v29, %v1272_v44  ;;  %806 = vmatmul.bf16.gmra.mxu0 %v473_v40 }
 0x1a4   : > { %v1429_v48 = vadd.f32 %v2997_v23, %v937_v46  ;;  %975 = vmatmul.bf16.gmra.mxu1 %v474_v43  ;;  %1144 = vmatmul.bf16.gmra.mxu2 %v473_v40  ;;  %v405_v40 = vld [vmem:[%s2955_s24 + $0x350] sm:$0xff] }
 0x1a5   : > { %1556 = vst [vmem:[%s3000_s12 + $0x1d8] sm:$0xff] %v1428_v47  ;;  %1313 = vmatmul.bf16.gmra.mxu3 %v474_v43  ;;  %v479_v44 = vpack.c.bf16 %v405_v40, %v403_v39  ;;  %v480_v47 = vpack.c.bf16 %v406_v42, %v404_v41 }
 0x1a6   : > { %1557 = vst [vmem:[%s3000_s12 + $0x1e0] sm:$0xff] %v1429_v48 }
 0x1a7   : > { %v1105_v49 = vpop.f32.mrf.mxu2 }
 0x1a8   : > { %v1274_v50 = vpop.f32.mrf.mxu3  ;;  %v769_v51 = vpop.f32.mrf.mxu0 }
 0x1a9   : > { %v1275_v52 = vadd.f32 %v1274_v50, %v1105_v49  ;;  %v938_v53 = vpop.f32.mrf.mxu1 }
 0x1aa   : > { %v939_v54 = vadd.f32 %v938_v53, %v769_v51 }
 0x1ab   : > { %v1430_v55 = vadd.f32 %v3003_v29, %v1275_v52 }
 0x1ac   : > { %v1431_v56 = vadd.f32 %v2997_v23, %v939_v54 }
 0x1ad   : > { %1558 = vst [vmem:[%s3000_s12 + $0x1e8] sm:$0xff] %v1430_v55 }
 0x1ae   : > { %1559 = vst [vmem:[%s3000_s12 + $0x1f0] sm:$0xff] %v1431_v56 }
 0x1af   : > { %v1107_v61 = vpop.f32.mrf.mxu2 }
 0x1b0   : > { %v1276_v63 = vpop.f32.mrf.mxu3  ;;  %v772_v0 = vpop.f32.mrf.mxu0 }
 0x1b1   : > { %v1277_v2 = vadd.f32 %v1276_v63, %v1107_v61  ;;  %v941_v3 = vpop.f32.mrf.mxu1  ;;  %v407_v61 = vld [vmem:[%s2955_s24 + $0x360] sm:$0xff]  ;;  %v408_v63 = vld [vmem:[%s2955_s24 + $0x368] sm:$0xff] }
 0x1b2   : > { %v942_v4 = vadd.f32 %v941_v3, %v772_v0  ;;  %v410_v0 = vld [vmem:[%s2955_s24 + $0x378] sm:$0xff] }
 0x1b3   : > { %v1432_v5 = vadd.f32 %v3003_v29, %v1277_v2  ;;  %811 = vmatmul.bf16.gmra.mxu0 %v475_v62 }
 0x1b4   : > { %v1433_v6 = vadd.f32 %v2997_v23, %v942_v4  ;;  %980 = vmatmul.bf16.gmra.mxu1 %v476_v1  ;;  %1149 = vmatmul.bf16.gmra.mxu2 %v475_v62  ;;  %v409_v62 = vld [vmem:[%s2955_s24 + $0x370] sm:$0xff] }
 0x1b5   : > { %1560 = vst [vmem:[%s3000_s12 + $0x1f8] sm:$0xff] %v1432_v5  ;;  %1318 = vmatmul.bf16.gmra.mxu3 %v476_v1  ;;  %v481_v2 = vpack.c.bf16 %v409_v62, %v407_v61  ;;  %v482_v5 = vpack.c.bf16 %v410_v0, %v408_v63 }
 0x1b6   : > { %1561 = vst [vmem:[%s3000_s12 + $0x200] sm:$0xff] %v1433_v6 }
 0x1b7   : > { %v1110_v7 = vpop.f32.mrf.mxu2 }
 0x1b8   : > { %v1279_v8 = vpop.f32.mrf.mxu3  ;;  %v774_v9 = vpop.f32.mrf.mxu0 }
 0x1b9   : > { %v1280_v10 = vadd.f32 %v1279_v8, %v1110_v7  ;;  %v943_v11 = vpop.f32.mrf.mxu1 }
 0x1ba   : > { %v944_v12 = vadd.f32 %v943_v11, %v774_v9 }
 0x1bb   : > { %v1434_v13 = vadd.f32 %v3003_v29, %v1280_v10 }
 0x1bc   : > { %v1435_v14 = vadd.f32 %v2997_v23, %v944_v12 }
 0x1bd   : > { %1562 = vst [vmem:[%s3000_s12 + $0x208] sm:$0xff] %v1434_v13 }
 0x1be   : > { %1563 = vst [vmem:[%s3000_s12 + $0x210] sm:$0xff] %v1435_v14 }
 0x1bf   : > { %v1112_v19 = vpop.f32.mrf.mxu2 }
 0x1c0   : > { %v1281_v21 = vpop.f32.mrf.mxu3  ;;  %v777_v22 = vpop.f32.mrf.mxu0 }
 0x1c1   : > { %v1282_v25 = vadd.f32 %v1281_v21, %v1112_v19  ;;  %v946_v26 = vpop.f32.mrf.mxu1  ;;  %v411_v19 = vld [vmem:[%s2955_s24 + $0x380] sm:$0xff]  ;;  %v412_v21 = vld [vmem:[%s2955_s24 + $0x388] sm:$0xff] }
 0x1c2   : > { %v947_v27 = vadd.f32 %v946_v26, %v777_v22  ;;  %v414_v22 = vld [vmem:[%s2955_s24 + $0x398] sm:$0xff] }
 0x1c3   : > { %v1436_v28 = vadd.f32 %v3003_v29, %v1282_v25  ;;  %816 = vmatmul.bf16.gmra.mxu0 %v477_v20 }
 0x1c4   : > { %v1437_v30 = vadd.f32 %v2997_v23, %v947_v27  ;;  %985 = vmatmul.bf16.gmra.mxu1 %v478_v24  ;;  %1154 = vmatmul.bf16.gmra.mxu2 %v477_v20  ;;  %v413_v20 = vld [vmem:[%s2955_s24 + $0x390] sm:$0xff] }
 0x1c5   : > { %1564 = vst [vmem:[%s3000_s12 + $0x218] sm:$0xff] %v1436_v28  ;;  %1323 = vmatmul.bf16.gmra.mxu3 %v478_v24  ;;  %v483_v25 = vpack.c.bf16 %v413_v20, %v411_v19  ;;  %v484_v28 = vpack.c.bf16 %v414_v22, %v412_v21 }
 0x1c6   : > { %1565 = vst [vmem:[%s3000_s12 + $0x220] sm:$0xff] %v1437_v30 }
 0x1c7   : > { %v1115_v31 = vpop.f32.mrf.mxu2 }
 0x1c8   : > { %v1284_v32 = vpop.f32.mrf.mxu3  ;;  %v779_v33 = vpop.f32.mrf.mxu0 }
 0x1c9   : > { %v1285_v34 = vadd.f32 %v1284_v32, %v1115_v31  ;;  %v948_v35 = vpop.f32.mrf.mxu1 }
 0x1ca   : > { %v949_v36 = vadd.f32 %v948_v35, %v779_v33 }
 0x1cb   : > { %v1438_v37 = vadd.f32 %v3003_v29, %v1285_v34 }
 0x1cc   : > { %v1439_v38 = vadd.f32 %v2997_v23, %v949_v36 }
 0x1cd   : > { %1566 = vst [vmem:[%s3000_s12 + $0x228] sm:$0xff] %v1438_v37 }
 0x1ce   : > { %1567 = vst [vmem:[%s3000_s12 + $0x230] sm:$0xff] %v1439_v38 }
 0x1cf   : > { %v1117_v43 = vpop.f32.mrf.mxu2 }
 0x1d0   : > { %v1286_v45 = vpop.f32.mrf.mxu3  ;;  %v782_v46 = vpop.f32.mrf.mxu0 }
 0x1d1   : > { %v1287_v48 = vadd.f32 %v1286_v45, %v1117_v43  ;;  %v951_v49 = vpop.f32.mrf.mxu1  ;;  %v415_v43 = vld [vmem:[%s2955_s24 + $0x3a0] sm:$0xff]  ;;  %v416_v45 = vld [vmem:[%s2955_s24 + $0x3a8] sm:$0xff] }
 0x1d2   : > { %v952_v50 = vadd.f32 %v951_v49, %v782_v46  ;;  %v418_v46 = vld [vmem:[%s2955_s24 + $0x3b8] sm:$0xff] }
 0x1d3   : > { %v1440_v51 = vadd.f32 %v3003_v29, %v1287_v48  ;;  %821 = vmatmul.bf16.gmra.mxu0 %v479_v44 }
 0x1d4   : > { %v1441_v52 = vadd.f32 %v2997_v23, %v952_v50  ;;  %990 = vmatmul.bf16.gmra.mxu1 %v480_v47  ;;  %1159 = vmatmul.bf16.gmra.mxu2 %v479_v44  ;;  %v417_v44 = vld [vmem:[%s2955_s24 + $0x3b0] sm:$0xff] }
 0x1d5   : > { %1568 = vst [vmem:[%s3000_s12 + $0x238] sm:$0xff] %v1440_v51  ;;  %1328 = vmatmul.bf16.gmra.mxu3 %v480_v47  ;;  %v485_v48 = vpack.c.bf16 %v417_v44, %v415_v43  ;;  %v486_v51 = vpack.c.bf16 %v418_v46, %v416_v45 }
 0x1d6   : > { %1569 = vst [vmem:[%s3000_s12 + $0x240] sm:$0xff] %v1441_v52 }
 0x1d7   : > { %v1120_v53 = vpop.f32.mrf.mxu2 }
 0x1d8   : > { %v1289_v54 = vpop.f32.mrf.mxu3  ;;  %v784_v55 = vpop.f32.mrf.mxu0 }
 0x1d9   : > { %v1290_v56 = vadd.f32 %v1289_v54, %v1120_v53  ;;  %v953_v57 = vpop.f32.mrf.mxu1 }
 0x1da   : > { %v954_v58 = vadd.f32 %v953_v57, %v784_v55 }
 0x1db   : > { %v1442_v59 = vadd.f32 %v3003_v29, %v1290_v56 }
 0x1dc   : > { %v1443_v60 = vadd.f32 %v2997_v23, %v954_v58 }
 0x1dd   : > { %1570 = vst [vmem:[%s3000_s12 + $0x248] sm:$0xff] %v1442_v59 }
 0x1de   : > { %1571 = vst [vmem:[%s3000_s12 + $0x250] sm:$0xff] %v1443_v60 }
 0x1df   : > { %v1122_v1 = vpop.f32.mrf.mxu2 }
 0x1e0   : > { %v1291_v3 = vpop.f32.mrf.mxu3  ;;  %v787_v4 = vpop.f32.mrf.mxu0 }
 0x1e1   : > { %v1292_v6 = vadd.f32 %v1291_v3, %v1122_v1  ;;  %v956_v7 = vpop.f32.mrf.mxu1  ;;  %v419_v1 = vld [vmem:[%s2955_s24 + $0x3c0] sm:$0xff]  ;;  %v420_v3 = vld [vmem:[%s2955_s24 + $0x3c8] sm:$0xff] }
 0x1e2   : > { %v957_v8 = vadd.f32 %v956_v7, %v787_v4  ;;  %v422_v4 = vld [vmem:[%s2955_s24 + $0x3d8] sm:$0xff] }
 0x1e3   : > { %v1444_v9 = vadd.f32 %v3003_v29, %v1292_v6  ;;  %826 = vmatmul.bf16.gmra.mxu0 %v481_v2 }
 0x1e4   : > { %v1445_v10 = vadd.f32 %v2997_v23, %v957_v8  ;;  %995 = vmatmul.bf16.gmra.mxu1 %v482_v5  ;;  %1164 = vmatmul.bf16.gmra.mxu2 %v481_v2  ;;  %v421_v2 = vld [vmem:[%s2955_s24 + $0x3d0] sm:$0xff] }
 0x1e5   : > { %1572 = vst [vmem:[%s3000_s12 + $0x258] sm:$0xff] %v1444_v9  ;;  %1333 = vmatmul.bf16.gmra.mxu3 %v482_v5  ;;  %v487_v6 = vpack.c.bf16 %v421_v2, %v419_v1  ;;  %v488_v9 = vpack.c.bf16 %v422_v4, %v420_v3 }
 0x1e6   : > { %1573 = vst [vmem:[%s3000_s12 + $0x260] sm:$0xff] %v1445_v10 }
 0x1e7   : > { %v1125_v11 = vpop.f32.mrf.mxu2 }
 0x1e8   : > { %v1294_v12 = vpop.f32.mrf.mxu3  ;;  %v789_v13 = vpop.f32.mrf.mxu0 }
 0x1e9   : > { %v1295_v14 = vadd.f32 %v1294_v12, %v1125_v11  ;;  %v958_v15 = vpop.f32.mrf.mxu1 }
 0x1ea   : > { %v959_v16 = vadd.f32 %v958_v15, %v789_v13 }
 0x1eb   : > { %v1446_v17 = vadd.f32 %v3003_v29, %v1295_v14 }
 0x1ec   : > { %v1447_v18 = vadd.f32 %v2997_v23, %v959_v16 }
 0x1ed   : > { %1574 = vst [vmem:[%s3000_s12 + $0x268] sm:$0xff] %v1446_v17 }
 0x1ee   : > { %1575 = vst [vmem:[%s3000_s12 + $0x270] sm:$0xff] %v1447_v18 }
 0x1ef   : > { %v1127_v24 = vpop.f32.mrf.mxu2 }
 0x1f0   : > { %v1296_v26 = vpop.f32.mrf.mxu3  ;;  %v792_v27 = vpop.f32.mrf.mxu0 }
 0x1f1   : > { %v1297_v30 = vadd.f32 %v1296_v26, %v1127_v24  ;;  %v961_v31 = vpop.f32.mrf.mxu1  ;;  %v423_v24 = vld [vmem:[%s2955_s24 + $0x3e0] sm:$0xff]  ;;  %v424_v26 = vld [vmem:[%s2955_s24 + $0x3e8] sm:$0xff] }
 0x1f2   : > { %v962_v32 = vadd.f32 %v961_v31, %v792_v27  ;;  %v426_v27 = vld [vmem:[%s2955_s24 + $0x3f8] sm:$0xff] }
 0x1f3   : > { %v1448_v33 = vadd.f32 %v3003_v29, %v1297_v30  ;;  %831 = vmatmul.bf16.gmra.mxu0 %v483_v25 }
 0x1f4   : > { %v1449_v34 = vadd.f32 %v2997_v23, %v962_v32  ;;  %1000 = vmatmul.bf16.gmra.mxu1 %v484_v28  ;;  %1169 = vmatmul.bf16.gmra.mxu2 %v483_v25  ;;  %v425_v25 = vld [vmem:[%s2955_s24 + $0x3f0] sm:$0xff] }
 0x1f5   : > { %1576 = vst [vmem:[%s3000_s12 + $0x278] sm:$0xff] %v1448_v33  ;;  %1338 = vmatmul.bf16.gmra.mxu3 %v484_v28  ;;  %v489_v30 = vpack.c.bf16 %v425_v25, %v423_v24  ;;  %v490_v33 = vpack.c.bf16 %v426_v27, %v424_v26 }
 0x1f6   : > { %1577 = vst [vmem:[%s3000_s12 + $0x280] sm:$0xff] %v1449_v34 }
 0x1f7   : > { %v1130_v35 = vpop.f32.mrf.mxu2 }
 0x1f8   : > { %v1299_v36 = vpop.f32.mrf.mxu3  ;;  %v794_v37 = vpop.f32.mrf.mxu0 }
 0x1f9   : > { %v1300_v38 = vadd.f32 %v1299_v36, %v1130_v35  ;;  %v963_v39 = vpop.f32.mrf.mxu1 }
 0x1fa   : > { %v964_v40 = vadd.f32 %v963_v39, %v794_v37 }
 0x1fb   : > { %v1450_v41 = vadd.f32 %v3003_v29, %v1300_v38 }
 0x1fc   : > { %v1451_v42 = vadd.f32 %v2997_v23, %v964_v40 }
 0x1fd   : > { %1578 = vst [vmem:[%s3000_s12 + $0x288] sm:$0xff] %v1450_v41 }
 0x1fe   : > { %1579 = vst [vmem:[%s3000_s12 + $0x290] sm:$0xff] %v1451_v42 }
 0x1ff   : > { %v1132_v47 = vpop.f32.mrf.mxu2 }
 0x200   : > { %v1301_v49 = vpop.f32.mrf.mxu3  ;;  %v797_v50 = vpop.f32.mrf.mxu0 }
 0x201   : > { %v1302_v52 = vadd.f32 %v1301_v49, %v1132_v47  ;;  %v966_v53 = vpop.f32.mrf.mxu1 }
 0x202   : > { %v967_v54 = vadd.f32 %v966_v53, %v797_v50 }
 0x203   : > { %v1452_v55 = vadd.f32 %v3003_v29, %v1302_v52  ;;  %836 = vmatmul.bf16.gmra.mxu0 %v485_v48 }
 0x204   : > { %v1453_v56 = vadd.f32 %v2997_v23, %v967_v54  ;;  %1005 = vmatmul.bf16.gmra.mxu1 %v486_v51  ;;  %1174 = vmatmul.bf16.gmra.mxu2 %v485_v48 }
 0x205   : > { %1580 = vst [vmem:[%s3000_s12 + $0x298] sm:$0xff] %v1452_v55  ;;  %1343 = vmatmul.bf16.gmra.mxu3 %v486_v51 }
 0x206   : > { %1581 = vst [vmem:[%s3000_s12 + $0x2a0] sm:$0xff] %v1453_v56 }
 0x207   : > { %v1135_v57 = vpop.f32.mrf.mxu2 }
 0x208   : > { %v1304_v58 = vpop.f32.mrf.mxu3  ;;  %v799_v59 = vpop.f32.mrf.mxu0 }
 0x209   : > { %v1305_v60 = vadd.f32 %v1304_v58, %v1135_v57  ;;  %v968_v61 = vpop.f32.mrf.mxu1 }
 0x20a   : > { %v969_v62 = vadd.f32 %v968_v61, %v799_v59 }
 0x20b   : > { %v1454_v63 = vadd.f32 %v3003_v29, %v1305_v60 }
 0x20c   : > { %v1455_v0 = vadd.f32 %v2997_v23, %v969_v62 }
 0x20d   : > { %1582 = vst [vmem:[%s3000_s12 + $0x2a8] sm:$0xff] %v1454_v63 }
 0x20e   : > { %1583 = vst [vmem:[%s3000_s12 + $0x2b0] sm:$0xff] %v1455_v0 }
 0x20f   : > { %v1137_v5 = vpop.f32.mrf.mxu2 }
 0x210   : > { %v1306_v7 = vpop.f32.mrf.mxu3  ;;  %v802_v8 = vpop.f32.mrf.mxu0 }
 0x211   : > { %v1307_v10 = vadd.f32 %v1306_v7, %v1137_v5  ;;  %v971_v11 = vpop.f32.mrf.mxu1 }
 0x212   : > { %v972_v12 = vadd.f32 %v971_v11, %v802_v8 }
 0x213   : > { %v1456_v13 = vadd.f32 %v3003_v29, %v1307_v10  ;;  %841 = vmatmul.bf16.gmra.mxu0 %v487_v6 }
 0x214   : > { %v1457_v14 = vadd.f32 %v2997_v23, %v972_v12  ;;  %1010 = vmatmul.bf16.gmra.mxu1 %v488_v9  ;;  %1179 = vmatmul.bf16.gmra.mxu2 %v487_v6 }
 0x215   : > { %1584 = vst [vmem:[%s3000_s12 + $0x2b8] sm:$0xff] %v1456_v13  ;;  %1348 = vmatmul.bf16.gmra.mxu3 %v488_v9 }
 0x216   : > { %1585 = vst [vmem:[%s3000_s12 + $0x2c0] sm:$0xff] %v1457_v14 }
 0x217   : > { %v1140_v15 = vpop.f32.mrf.mxu2 }
 0x218   : > { %v1309_v16 = vpop.f32.mrf.mxu3  ;;  %v804_v17 = vpop.f32.mrf.mxu0 }
 0x219   : > { %v1310_v18 = vadd.f32 %v1309_v16, %v1140_v15  ;;  %v973_v19 = vpop.f32.mrf.mxu1 }
 0x21a   : > { %v974_v20 = vadd.f32 %v973_v19, %v804_v17 }
 0x21b   : > { %v1458_v21 = vadd.f32 %v3003_v29, %v1310_v18 }
 0x21c   : > { %v1459_v22 = vadd.f32 %v2997_v23, %v974_v20 }
 0x21d   : > { %1586 = vst [vmem:[%s3000_s12 + $0x2c8] sm:$0xff] %v1458_v21 }
 0x21e   : > { %1587 = vst [vmem:[%s3000_s12 + $0x2d0] sm:$0xff] %v1459_v22 }
 0x21f   : > { %v1142_v28 = vpop.f32.mrf.mxu2 }
 0x220   : > { %v1311_v31 = vpop.f32.mrf.mxu3  ;;  %v807_v32 = vpop.f32.mrf.mxu0 }
 0x221   : > { %v1312_v34 = vadd.f32 %v1311_v31, %v1142_v28  ;;  %v976_v35 = vpop.f32.mrf.mxu1 }
 0x222   : > { %v977_v36 = vadd.f32 %v976_v35, %v807_v32 }
 0x223   : > { %v1460_v37 = vadd.f32 %v3003_v29, %v1312_v34  ;;  %846 = vmatmul.bf16.gmra.mxu0 %v489_v30 }
 0x224   : > { %v1461_v38 = vadd.f32 %v2997_v23, %v977_v36  ;;  %1015 = vmatmul.bf16.gmra.mxu1 %v490_v33  ;;  %1184 = vmatmul.bf16.gmra.mxu2 %v489_v30 }
 0x225   : > { %1588 = vst [vmem:[%s3000_s12 + $0x2d8] sm:$0xff] %v1460_v37  ;;  %1353 = vmatmul.bf16.gmra.mxu3 %v490_v33 }
 0x226   : > { %1589 = vst [vmem:[%s3000_s12 + $0x2e0] sm:$0xff] %v1461_v38 }
 0x227   : > { %v1145_v39 = vpop.f32.mrf.mxu2 }
 0x228   : > { %v1314_v40 = vpop.f32.mrf.mxu3  ;;  %v809_v41 = vpop.f32.mrf.mxu0 }
 0x229   : > { %v1315_v42 = vadd.f32 %v1314_v40, %v1145_v39  ;;  %v978_v43 = vpop.f32.mrf.mxu1 }
 0x22a   : > { %v979_v44 = vadd.f32 %v978_v43, %v809_v41 }
 0x22b   : > { %v1462_v45 = vadd.f32 %v3003_v29, %v1315_v42 }
 0x22c   : > { %v1463_v46 = vadd.f32 %v2997_v23, %v979_v44 }
 0x22d   : > { %1590 = vst [vmem:[%s3000_s12 + $0x2e8] sm:$0xff] %v1462_v45 }
 0x22e   : > { %1591 = vst [vmem:[%s3000_s12 + $0x2f0] sm:$0xff] %v1463_v46 }
 0x22f   : > { %v1147_v47 = vpop.f32.mrf.mxu2 }
 0x230   : > { %v1316_v48 = vpop.f32.mrf.mxu3  ;;  %v812_v49 = vpop.f32.mrf.mxu0 }
 0x231   : > { %v1317_v50 = vadd.f32 %v1316_v48, %v1147_v47  ;;  %v981_v51 = vpop.f32.mrf.mxu1 }
 0x232   : > { %v982_v52 = vadd.f32 %v981_v51, %v812_v49 }
 0x233   : > { %v1464_v53 = vadd.f32 %v3003_v29, %v1317_v50 }
 0x234   : > { %v1465_v54 = vadd.f32 %v2997_v23, %v982_v52 }
 0x235   : > { %1592 = vst [vmem:[%s3000_s12 + $0x2f8] sm:$0xff] %v1464_v53 }
 0x236   : > { %1593 = vst [vmem:[%s3000_s12 + $0x300] sm:$0xff] %v1465_v54 }
 0x237   : > { %v1150_v55 = vpop.f32.mrf.mxu2 }
 0x238   : > { %v1319_v56 = vpop.f32.mrf.mxu3  ;;  %v814_v57 = vpop.f32.mrf.mxu0 }
 0x239   : > { %v1320_v58 = vadd.f32 %v1319_v56, %v1150_v55  ;;  %v983_v59 = vpop.f32.mrf.mxu1 }
 0x23a   : > { %v984_v60 = vadd.f32 %v983_v59, %v814_v57 }
 0x23b   : > { %v1466_v61 = vadd.f32 %v3003_v29, %v1320_v58 }
 0x23c   : > { %v1467_v62 = vadd.f32 %v2997_v23, %v984_v60 }
 0x23d   : > { %1594 = vst [vmem:[%s3000_s12 + $0x308] sm:$0xff] %v1466_v61 }
 0x23e   : > { %1595 = vst [vmem:[%s3000_s12 + $0x310] sm:$0xff] %v1467_v62 }
 0x23f   : > { %v1152_v63 = vpop.f32.mrf.mxu2 }
 0x240   : > { %v1321_v0 = vpop.f32.mrf.mxu3  ;;  %v817_v1 = vpop.f32.mrf.mxu0 }
 0x241   : > { %v1322_v2 = vadd.f32 %v1321_v0, %v1152_v63  ;;  %v986_v3 = vpop.f32.mrf.mxu1 }
 0x242   : > { %v987_v4 = vadd.f32 %v986_v3, %v817_v1 }
 0x243   : > { %v1468_v5 = vadd.f32 %v3003_v29, %v1322_v2 }
 0x244   : > { %v1469_v6 = vadd.f32 %v2997_v23, %v987_v4 }
 0x245   : > { %1596 = vst [vmem:[%s3000_s12 + $0x318] sm:$0xff] %v1468_v5 }
 0x246   : > { %1597 = vst [vmem:[%s3000_s12 + $0x320] sm:$0xff] %v1469_v6 }
 0x247   : > { %v1155_v7 = vpop.f32.mrf.mxu2 }
 0x248   : > { %v1324_v8 = vpop.f32.mrf.mxu3  ;;  %v819_v9 = vpop.f32.mrf.mxu0 }
 0x249   : > { %v1325_v10 = vadd.f32 %v1324_v8, %v1155_v7  ;;  %v988_v11 = vpop.f32.mrf.mxu1 }
 0x24a   : > { %v989_v12 = vadd.f32 %v988_v11, %v819_v9 }
 0x24b   : > { %v1470_v13 = vadd.f32 %v3003_v29, %v1325_v10 }
 0x24c   : > { %v1471_v14 = vadd.f32 %v2997_v23, %v989_v12 }
 0x24d   : > { %1598 = vst [vmem:[%s3000_s12 + $0x328] sm:$0xff] %v1470_v13 }
 0x24e   : > { %1599 = vst [vmem:[%s3000_s12 + $0x330] sm:$0xff] %v1471_v14 }
 0x24f   : > { %v1157_v15 = vpop.f32.mrf.mxu2 }
 0x250   : > { %v1326_v16 = vpop.f32.mrf.mxu3  ;;  %v822_v17 = vpop.f32.mrf.mxu0 }
 0x251   : > { %v1327_v18 = vadd.f32 %v1326_v16, %v1157_v15  ;;  %v991_v19 = vpop.f32.mrf.mxu1 }
 0x252   : > { %v992_v20 = vadd.f32 %v991_v19, %v822_v17 }
 0x253   : > { %v1472_v21 = vadd.f32 %v3003_v29, %v1327_v18 }
 0x254   : > { %v1473_v22 = vadd.f32 %v2997_v23, %v992_v20 }
 0x255   : > { %1600 = vst [vmem:[%s3000_s12 + $0x338] sm:$0xff] %v1472_v21 }
 0x256   : > { %1601 = vst [vmem:[%s3000_s12 + $0x340] sm:$0xff] %v1473_v22 }
 0x257   : > { %v1160_v24 = vpop.f32.mrf.mxu2 }
 0x258   : > { %v1329_v25 = vpop.f32.mrf.mxu3  ;;  %v824_v26 = vpop.f32.mrf.mxu0 }
 0x259   : > { %v1330_v27 = vadd.f32 %v1329_v25, %v1160_v24  ;;  %v993_v28 = vpop.f32.mrf.mxu1 }
 0x25a   : > { %v994_v30 = vadd.f32 %v993_v28, %v824_v26 }
 0x25b   : > { %v1474_v31 = vadd.f32 %v3003_v29, %v1330_v27 }
 0x25c   : > { %v1475_v32 = vadd.f32 %v2997_v23, %v994_v30 }
 0x25d   : > { %1602 = vst [vmem:[%s3000_s12 + $0x348] sm:$0xff] %v1474_v31 }
 0x25e   : > { %1603 = vst [vmem:[%s3000_s12 + $0x350] sm:$0xff] %v1475_v32 }
 0x25f   : > { %v1162_v33 = vpop.f32.mrf.mxu2 }
 0x260   : > { %v1331_v34 = vpop.f32.mrf.mxu3  ;;  %v827_v35 = vpop.f32.mrf.mxu0 }
 0x261   : > { %v1332_v36 = vadd.f32 %v1331_v34, %v1162_v33  ;;  %v996_v37 = vpop.f32.mrf.mxu1 }
 0x262   : > { %v997_v38 = vadd.f32 %v996_v37, %v827_v35 }
 0x263   : > { %v1476_v39 = vadd.f32 %v3003_v29, %v1332_v36 }
 0x264   : > { %v1477_v40 = vadd.f32 %v2997_v23, %v997_v38 }
 0x265   : > { %1604 = vst [vmem:[%s3000_s12 + $0x358] sm:$0xff] %v1476_v39 }
 0x266   : > { %1605 = vst [vmem:[%s3000_s12 + $0x360] sm:$0xff] %v1477_v40 }
 0x267   : > { %v1165_v41 = vpop.f32.mrf.mxu2 }
 0x268   : > { %v1334_v42 = vpop.f32.mrf.mxu3  ;;  %v829_v43 = vpop.f32.mrf.mxu0 }
 0x269   : > { %v1335_v44 = vadd.f32 %v1334_v42, %v1165_v41  ;;  %v998_v45 = vpop.f32.mrf.mxu1 }
 0x26a   : > { %v999_v46 = vadd.f32 %v998_v45, %v829_v43 }
 0x26b   : > { %v1478_v47 = vadd.f32 %v3003_v29, %v1335_v44 }
 0x26c   : > { %v1479_v48 = vadd.f32 %v2997_v23, %v999_v46 }
 0x26d   : > { %1606 = vst [vmem:[%s3000_s12 + $0x368] sm:$0xff] %v1478_v47 }
 0x26e   : > { %1607 = vst [vmem:[%s3000_s12 + $0x370] sm:$0xff] %v1479_v48 }
 0x26f   : > { %v1167_v49 = vpop.f32.mrf.mxu2 }
 0x270   : > { %v1336_v50 = vpop.f32.mrf.mxu3  ;;  %v832_v51 = vpop.f32.mrf.mxu0 }
 0x271   : > { %v1337_v52 = vadd.f32 %v1336_v50, %v1167_v49  ;;  %v1001_v53 = vpop.f32.mrf.mxu1 }
 0x272   : > { %v1002_v54 = vadd.f32 %v1001_v53, %v832_v51 }
 0x273   : > { %v1480_v55 = vadd.f32 %v3003_v29, %v1337_v52 }
 0x274   : > { %v1481_v56 = vadd.f32 %v2997_v23, %v1002_v54 }
 0x275   : > { %1608 = vst [vmem:[%s3000_s12 + $0x378] sm:$0xff] %v1480_v55 }
 0x276   : > { %1609 = vst [vmem:[%s3000_s12 + $0x380] sm:$0xff] %v1481_v56 }
 0x277   : > { %v1170_v57 = vpop.f32.mrf.mxu2 }
 0x278   : > { %v1339_v58 = vpop.f32.mrf.mxu3  ;;  %v834_v59 = vpop.f32.mrf.mxu0 }
 0x279   : > { %v1340_v60 = vadd.f32 %v1339_v58, %v1170_v57  ;;  %v1003_v61 = vpop.f32.mrf.mxu1 }
 0x27a   : > { %v1004_v62 = vadd.f32 %v1003_v61, %v834_v59 }
 0x27b   : > { %v1482_v63 = vadd.f32 %v3003_v29, %v1340_v60 }
 0x27c   : > { %v1483_v0 = vadd.f32 %v2997_v23, %v1004_v62 }
 0x27d   : > { %1610 = vst [vmem:[%s3000_s12 + $0x388] sm:$0xff] %v1482_v63 }
 0x27e   : > { %1611 = vst [vmem:[%s3000_s12 + $0x390] sm:$0xff] %v1483_v0 }
 0x27f   : > { %v1172_v1 = vpop.f32.mrf.mxu2 }
 0x280   : > { %v1341_v2 = vpop.f32.mrf.mxu3  ;;  %v837_v3 = vpop.f32.mrf.mxu0 }
 0x281   : > { %v1342_v4 = vadd.f32 %v1341_v2, %v1172_v1  ;;  %v1006_v5 = vpop.f32.mrf.mxu1 }
 0x282   : > { %v1007_v6 = vadd.f32 %v1006_v5, %v837_v3 }
 0x283   : > { %v1484_v7 = vadd.f32 %v3003_v29, %v1342_v4 }
 0x284   : > { %v1485_v8 = vadd.f32 %v2997_v23, %v1007_v6 }
 0x285   : > { %1612 = vst [vmem:[%s3000_s12 + $0x398] sm:$0xff] %v1484_v7 }
 0x286   : > { %1613 = vst [vmem:[%s3000_s12 + $0x3a0] sm:$0xff] %v1485_v8 }
 0x287   : > { %v1175_v9 = vpop.f32.mrf.mxu2 }
 0x288   : > { %v1344_v10 = vpop.f32.mrf.mxu3  ;;  %v839_v11 = vpop.f32.mrf.mxu0 }
 0x289   : > { %v1345_v12 = vadd.f32 %v1344_v10, %v1175_v9  ;;  %v1008_v13 = vpop.f32.mrf.mxu1 }
 0x28a   : > { %v1009_v14 = vadd.f32 %v1008_v13, %v839_v11 }
 0x28b   : > { %v1486_v15 = vadd.f32 %v3003_v29, %v1345_v12 }
 0x28c   : > { %v1487_v16 = vadd.f32 %v2997_v23, %v1009_v14 }
 0x28d   : > { %1614 = vst [vmem:[%s3000_s12 + $0x3a8] sm:$0xff] %v1486_v15 }
 0x28e   : > { %1615 = vst [vmem:[%s3000_s12 + $0x3b0] sm:$0xff] %v1487_v16 }
 0x28f   : > { %v1177_v17 = vpop.f32.mrf.mxu2 }
 0x290   : > { %v1346_v18 = vpop.f32.mrf.mxu3  ;;  %v842_v19 = vpop.f32.mrf.mxu0 }
 0x291   : > { %v1347_v20 = vadd.f32 %v1346_v18, %v1177_v17  ;;  %v1011_v21 = vpop.f32.mrf.mxu1 }
 0x292   : > { %v1012_v22 = vadd.f32 %v1011_v21, %v842_v19 }
 0x293   : > { %v1488_v24 = vadd.f32 %v3003_v29, %v1347_v20 }
 0x294   : > { %v1489_v25 = vadd.f32 %v2997_v23, %v1012_v22 }
 0x295   : > { %1616 = vst [vmem:[%s3000_s12 + $0x3b8] sm:$0xff] %v1488_v24 }
 0x296   : > { %1617 = vst [vmem:[%s3000_s12 + $0x3c0] sm:$0xff] %v1489_v25 }
 0x297   : > { %v1180_v26 = vpop.f32.mrf.mxu2 }
 0x298   : > { %v1349_v27 = vpop.f32.mrf.mxu3  ;;  %v844_v28 = vpop.f32.mrf.mxu0 }
 0x299   : > { %v1350_v30 = vadd.f32 %v1349_v27, %v1180_v26  ;;  %v1013_v31 = vpop.f32.mrf.mxu1 }
 0x29a   : > { %v1014_v32 = vadd.f32 %v1013_v31, %v844_v28 }
 0x29b   : > { %v1490_v33 = vadd.f32 %v3003_v29, %v1350_v30 }
 0x29c   : > { %v1491_v34 = vadd.f32 %v2997_v23, %v1014_v32 }
 0x29d   : > { %1618 = vst [vmem:[%s3000_s12 + $0x3c8] sm:$0xff] %v1490_v33 }
 0x29e   : > { %1619 = vst [vmem:[%s3000_s12 + $0x3d0] sm:$0xff] %v1491_v34 }
 0x29f   : > { %v1182_v35 = vpop.f32.mrf.mxu2 }
 0x2a0   : > { %v1351_v36 = vpop.f32.mrf.mxu3  ;;  %v847_v37 = vpop.f32.mrf.mxu0 }
 0x2a1   : > { %v1352_v38 = vadd.f32 %v1351_v36, %v1182_v35  ;;  %v1016_v39 = vpop.f32.mrf.mxu1 }
 0x2a2   : > { %v1017_v40 = vadd.f32 %v1016_v39, %v847_v37 }
 0x2a3   : > { %v1492_v41 = vadd.f32 %v3003_v29, %v1352_v38 }
 0x2a4   : > { %v1493_v42 = vadd.f32 %v2997_v23, %v1017_v40 }
 0x2a5   : > { %1620 = vst [vmem:[%s3000_s12 + $0x3d8] sm:$0xff] %v1492_v41 }
 0x2a6   : > { %1621 = vst [vmem:[%s3000_s12 + $0x3e0] sm:$0xff] %v1493_v42 }
 0x2a7   : > { %v1185_v43 = vpop.f32.mrf.mxu2 }
 0x2a8   : > { %v1354_v44 = vpop.f32.mrf.mxu3  ;;  %v849_v45 = vpop.f32.mrf.mxu0 }
 0x2a9   : > { %v1355_v46 = vadd.f32 %v1354_v44, %v1185_v43  ;;  %v1018_v47 = vpop.f32.mrf.mxu1 }
 0x2aa   : > { %v1019_v48 = vadd.f32 %v1018_v47, %v849_v45 }
 0x2ab   : > { %v1494_v49 = vadd.f32 %v3003_v29, %v1355_v46 }
 0x2ac   : > { %v1495_v50 = vadd.f32 %v2997_v23, %v1019_v48 }
 0x2ad   : > { %1622 = vst [vmem:[%s3000_s12 + $0x3e8] sm:$0xff] %v1494_v49 }
 0x2ae   : > { %1623 = vst [vmem:[%s3000_s12 + $0x3f0] sm:$0xff] %v1495_v50 }
 0x2af   : > { %v1187_v51 = vpop.f32.mrf.mxu2 }
 0x2b0   : > { %v1356_v52 = vpop.f32.mrf.mxu3 }
 0x2b1   : > { %v1357_v53 = vadd.f32 %v1356_v52, %v1187_v51  ;;  %2019 = sbr.rel (!%p2744_p3) target bundleno = 758 (0x2f6), region = 44 }
 0x2b3   : > { %v1496_v54 = vadd.f32 %v3003_v29, %v1357_v53 }
 0x2b5   : > { %1624 = vst [vmem:[%s3000_s12 + $0x3f8] sm:$0xff] %v1496_v54 }
 0x2b6   : > { %s3519_s29 = smov (!%p2023_p9, %s2022_s29), 64 }
 0x2b7   : > { %s2479_s7 = sshll.u32 %s3519_s29, 4 }
 0x2b8   : > { %p2434_p10 = scmp.eq.s32.totalorder %s2479_s7, 0 }
 0x2b9   : > { %s3364_s8 = sshrl.u32 (!%p2434_p10), %s3519_s29, 4 }
 0x2ba   : > { %2034 = sbr.rel (%p2434_p10) target bundleno = 758 (0x2f6), region = 48  ;;  %p2435_p11 = scmp.le.s32.totalorder (!%p2434_p10), %s3364_s8, 0 }
 0x2bf   : > { %2215 = sbr.rel (%p2435_p11) target bundleno = 741 (0x2e5), region = 102  ;;  %s3507_s14 = smov (!%p2435_p11), %s3358_s6 }
 0x2c0   : > { %s3508_s20 = smov (!%p2435_p11), %s3000_s12  ;;  %s3373_s9 = smov (!%p2435_p11), 0  }
 0x2c1   : > { %s3375_s10 = smov (!%p2435_p11), 0  }
 0x2c4 LB: >> { %v2047_v23 = vld [vmem:[%s2666_s20] sm:$0xff]  ;;  %v2049_v29 = vld [vmem:[%s2666_s20 + $0x10] sm:$0xff]  ;;  %s2111_s11 = sadd.s32 1, %s2670_s9  ;;  %v2079_v5 = vld [vmem:[%s2666_s20 + $0x8] sm:$0xff]  ;;  %s2041_s10 = sadd.s32 1, %s2674_s10   ;;  %s2674_s10 = sphi %s3375_s10, %s2041_s10   ;;  %s2670_s9 = sphi %s3373_s9, %s3511_s9   ;;  %s2666_s20 = sphi %s3508_s20, %s3510_s20   ;;  %s2662_s14 = sphi %s3507_s14, %s3509_s14  }
 0x2c5   : >> { %v2051_v55 = vld [vmem:[%s2666_s20 + $0x20] sm:$0xff]  ;;  %2048 = vst [vmem:[%s2662_s14] sm:$0xff] %v2047_v23  ;;  %v2053_v56 = vld [vmem:[%s2666_s20 + $0x30] sm:$0xff]  ;;  %p2112_p12 = scmp.ge.s32.totalorder %s2111_s11, %s3364_s8  ;;  %v2081_v6 = vld [vmem:[%s2666_s20 + $0x18] sm:$0xff]  ;;  %p2040_p13 = scmp.ge.s32.totalorder %s2041_s10, %s3364_s8 }
 0x2c6   : >> { %2050 = vst [vmem:[%s2662_s14 + $0x10] sm:$0xff] %v2049_v29  ;;  %v2055_v57 = vld [vmem:[%s2666_s20 + $0x40] sm:$0xff]  ;;  %v2057_v58 = vld [vmem:[%s2666_s20 + $0x50] sm:$0xff]  ;;  %v2083_v7 = vld [vmem:[%s2666_s20 + $0x28] sm:$0xff] }
 0x2c7   : >> { %2052 = vst [vmem:[%s2662_s14 + $0x20] sm:$0xff] %v2051_v55  ;;  %s3521_s11 = smov (%p2112_p12, %s2111_s11), 0  ;;  %v2059_v59 = vld [vmem:[%s2666_s20 + $0x60] sm:$0xff]  ;;  %v2061_v60 = vld [vmem:[%s2666_s20 + $0x70] sm:$0xff]  ;;  %v2085_v8 = vld [vmem:[%s2666_s20 + $0x38] sm:$0xff] }
 0x2c8   : >> { %2054 = vst [vmem:[%s2662_s14 + $0x30] sm:$0xff] %v2053_v56  ;;  %s2436_s17 = sshll.u32 %s3521_s11, 8  ;;  %v2063_v61 = vld [vmem:[%s2666_s20 + $0x80] sm:$0xff]  ;;  %v2065_v62 = vld [vmem:[%s2666_s20 + $0x90] sm:$0xff]  ;;  %v2087_v9 = vld [vmem:[%s2666_s20 + $0x48] sm:$0xff]  ;;  %s3511_s9 = smov %s3521_s11 }
 0x2c9   : >> { %2056 = vst [vmem:[%s2662_s14 + $0x40] sm:$0xff] %v2055_v57  ;;  %s3407_s19 = scalar_lea.vmem %s3000_s12, %s2436_s17 [#allocation2]   ;;  %s3410_s21 = scalar_lea.vmem %s3358_s6, %s2436_s17   ;;  %v2067_v63 = vld [vmem:[%s2666_s20 + $0xa0] sm:$0xff]  ;;  %v2069_v0 = vld [vmem:[%s2666_s20 + $0xb0] sm:$0xff]  ;;  %v2089_v10 = vld [vmem:[%s2666_s20 + $0x58] sm:$0xff] }
 0x2ca   : >> { %2058 = vst [vmem:[%s2662_s14 + $0x50] sm:$0xff] %v2057_v58  ;;  %v2071_v1 = vld [vmem:[%s2666_s20 + $0xc0] sm:$0xff]  ;;  %v2073_v2 = vld [vmem:[%s2666_s20 + $0xd0] sm:$0xff]  ;;  %v2091_v11 = vld [vmem:[%s2666_s20 + $0x68] sm:$0xff] }
 0x2cb   : >> { %2060 = vst [vmem:[%s2662_s14 + $0x60] sm:$0xff] %v2059_v59  ;;  %v2075_v3 = vld [vmem:[%s2666_s20 + $0xe0] sm:$0xff]  ;;  %v2077_v4 = vld [vmem:[%s2666_s20 + $0xf0] sm:$0xff]  ;;  %v2093_v12 = vld [vmem:[%s2666_s20 + $0x78] sm:$0xff] }
 0x2cc   : >> { %2062 = vst [vmem:[%s2662_s14 + $0x70] sm:$0xff] %v2061_v60  ;;  %v2095_v13 = vld [vmem:[%s2666_s20 + $0x88] sm:$0xff]  ;;  %v2097_v14 = vld [vmem:[%s2666_s20 + $0x98] sm:$0xff] }
 0x2cd   : >> { %2064 = vst [vmem:[%s2662_s14 + $0x80] sm:$0xff] %v2063_v61  ;;  %v2099_v15 = vld [vmem:[%s2666_s20 + $0xa8] sm:$0xff]  ;;  %v2101_v16 = vld [vmem:[%s2666_s20 + $0xb8] sm:$0xff] }
 0x2ce   : >> { %2066 = vst [vmem:[%s2662_s14 + $0x90] sm:$0xff] %v2065_v62  ;;  %v2103_v17 = vld [vmem:[%s2666_s20 + $0xc8] sm:$0xff]  ;;  %v2105_v18 = vld [vmem:[%s2666_s20 + $0xd8] sm:$0xff] }
 0x2cf   : >> { %2068 = vst [vmem:[%s2662_s14 + $0xa0] sm:$0xff] %v2067_v63  ;;  %v2107_v19 = vld [vmem:[%s2666_s20 + $0xe8] sm:$0xff]  ;;  %v2109_v20 = vld [vmem:[%s2666_s20 + $0xf8] sm:$0xff]  ;;  %s3510_s20 = smov %s3407_s19 }
 0x2d0   : >> { %2070 = vst [vmem:[%s2662_s14 + $0xb0] sm:$0xff] %v2069_v0 }
 0x2d1   : >> { %2072 = vst [vmem:[%s2662_s14 + $0xc0] sm:$0xff] %v2071_v1 }
 0x2d2   : >> { %2074 = vst [vmem:[%s2662_s14 + $0xd0] sm:$0xff] %v2073_v2 }
 0x2d3   : >> { %2076 = vst [vmem:[%s2662_s14 + $0xe0] sm:$0xff] %v2075_v3 }
 0x2d4   : >> { %2078 = vst [vmem:[%s2662_s14 + $0xf0] sm:$0xff] %v2077_v4 }
 0x2d5   : >> { %2080 = vst [vmem:[%s2662_s14 + $0x8] sm:$0xff] %v2079_v5 }
 0x2d6   : >> { %2082 = vst [vmem:[%s2662_s14 + $0x18] sm:$0xff] %v2081_v6 }
 0x2d7   : >> { %2084 = vst [vmem:[%s2662_s14 + $0x28] sm:$0xff] %v2083_v7 }
 0x2d8   : >> { %2086 = vst [vmem:[%s2662_s14 + $0x38] sm:$0xff] %v2085_v8 }
 0x2d9   : >> { %2088 = vst [vmem:[%s2662_s14 + $0x48] sm:$0xff] %v2087_v9 }
 0x2da   : >> { %2090 = vst [vmem:[%s2662_s14 + $0x58] sm:$0xff] %v2089_v10 }
 0x2db   : >> { %2092 = vst [vmem:[%s2662_s14 + $0x68] sm:$0xff] %v2091_v11 }
 0x2dc   : >> { %2094 = vst [vmem:[%s2662_s14 + $0x78] sm:$0xff] %v2093_v12 }
 0x2dd   : >> { %2096 = vst [vmem:[%s2662_s14 + $0x88] sm:$0xff] %v2095_v13 }
 0x2de   : >> { %2098 = vst [vmem:[%s2662_s14 + $0x98] sm:$0xff] %v2097_v14 }
 0x2df   : >> { %2100 = vst [vmem:[%s2662_s14 + $0xa8] sm:$0xff] %v2099_v15 }
 0x2e0   : >> { %2102 = vst [vmem:[%s2662_s14 + $0xb8] sm:$0xff] %v2101_v16  ;;  %2043 = sbr.rel (!%p2040_p13) target bundleno = 708 (0x2c4), region = 108 }
 0x2e1   : >> { %2104 = vst [vmem:[%s2662_s14 + $0xc8] sm:$0xff] %v2103_v17 }
 0x2e2   : >> { %2106 = vst [vmem:[%s2662_s14 + $0xd8] sm:$0xff] %v2105_v18 }
 0x2e3   : >> { %2108 = vst [vmem:[%s2662_s14 + $0xe8] sm:$0xff] %v2107_v19 }
 0x2e4   : >> { %2110 = vst [vmem:[%s2662_s14 + $0xf8] sm:$0xff] %v2109_v20  ;;  %s3509_s14 = smov %s3410_s21 }
 0x2e5 PF: > { %s3475_s23 = sand.u32 15, %s3519_s29   ;;  %s2482_s24 = sshll.u32 %s3364_s8, 8 }
 0x2e6   : > { %s3479_s25 = scalar_lea.vmem %s3000_s12, %s2482_s24 [#allocation2]   ;;  %s2124_s26 = scalar_lea.vmem %s3358_s6, %s2482_s24  }
 0x2e7   : > { %p2441_p0 = scmp.le.s32.totalorder %s3475_s23, 0 }
 0x2e8   : > { %s2676_s27 = smov (!%p2441_p0), %s2124_s26   ;;  %s2680_s28 = smov (!%p2441_p0), %s3479_s25  }
 0x2e9   : > { %2229 = sbr.rel (%p2441_p0) target bundleno = 758 (0x2f6), region = 113  ;;  %s2684_s30 = smov (!%p2441_p0), 0  }
 0x2ea   : > { %s2688_s4 = smov (!%p2441_p0), 0  }
 0x2ee LB: >> { %v2134_v21 = vld [vmem:[%s2682_s28] sm:$0xff]  ;;  %v2136_v22 = vld [vmem:[%s2682_s28 + $0x8] sm:$0xff]  ;;  %s2138_s12 = sadd.s32 1, %s2686_s30  ;;  %s2128_s4 = sadd.s32 1, %s2690_s4   ;;  %s2690_s4 = sphi %s2688_s4, %s2128_s4   ;;  %s2686_s30 = sphi %s2684_s30, %s2685_s30   ;;  %s2682_s28 = sphi %s2680_s28, %s2143_s28   ;;  %s2678_s27 = sphi %s2676_s27, %s2144_s27  }
 0x2ef   : >> { %2135 = vst [vmem:[%s2678_s27] sm:$0xff] %v2134_v21  ;;  %p2139_p1 = scmp.ge.s32.totalorder %s2138_s12, %s3475_s23  ;;  %p2127_p2 = scmp.ge.s32.totalorder %s2128_s4, %s3475_s23 }
 0x2f0   : >> { %2137 = vst [vmem:[%s2678_s27 + $0x8] sm:$0xff] %v2136_v22 }
 0x2f1   : >> { %s3523_s12 = smov (%p2139_p1, %s2138_s12), 0  ;;  %2130 = sbr.rel (!%p2127_p2) target bundleno = 750 (0x2ee), region = 119 }
 0x2f2   : >> { %s2442_s29 = sshll.u32 %s3523_s12, 4  ;;  %s2685_s30 = smov %s3523_s12  }
 0x2f3   : >> { %s2143_s28 = scalar_lea.vmem %s3479_s25, %s2442_s29 [#allocation2]   ;;  %s2144_s27 = scalar_lea.vmem %s2124_s26, %s2442_s29  }
 0x2f6 PF: > { %s13_s16 = sadd.s32 1, %s2658_s16   ;;  %s3512_s12 = smov %s2646_s13 }
 0x2f7   : > { %p10_p3 = scmp.ge.s32.totalorder %s13_s16, 4   ;;  %s3513_s13 = smov %s2753_s22 }
 0x2f8   : > { %s3514_s14 = smov %s2654_s15  ;;  %s3515_s15 = smov %s3517_s18 }
 0x2f9   :  { %12 = sbr.rel (!%p10_p3) target bundleno = 3 (0x3), region = 130 }

</bundles_post_ra>
